<compile_context>
chip_gen: v7x
topology: tpu7x:2x2x1
jax: 0.10.0
libtpu: 0.0.40
codegen_flags: <defaults>
</compile_context>

<pallas_src>
import functools

import jax
import jax.numpy as jnp
from jax.experimental import pallas as pl
from jax.experimental.pallas import tpu as pltpu


# ------------------------- generation-gated defaults -------------------------

def _vmem_capacity_bytes():
    try:
        info = pltpu.get_tpu_info()
        cap = getattr(info, "vmem_capacity_bytes", None)
        if cap:
            return int(cap)
    except Exception:
        pass
    return 64 * 1024 * 1024  # conservative: assume v7x-sized VMEM


_VMEM_CAP = _vmem_capacity_bytes()
if _VMEM_CAP >= 100 * 1024 * 1024:      # v5e / v6e (128 MiB VMEM, 1 TC)
    _DEFAULT_TB_MAX = 4096
    _VMEM_LIMIT = 96 * 1024 * 1024
else:                                    # v7x (64 MiB VMEM, 2 TCs)
    _DEFAULT_TB_MAX = 2048
    _VMEM_LIMIT = 48 * 1024 * 1024


def _round_up(x, m):
    return ((x + m - 1) // m) * m


def _pick_batch_tile(batch, tb_max):
    """Batch tile: full block for tiny B; otherwise a multiple of 16 sized so
    the grid has >= 2 steps (lets dimension_semantics=('parallel',) shard the
    batch across v7x's two TensorCores; harmless elsewhere)."""
    if batch <= 32:
        return batch  # block == full dim satisfies the (8,128)/(16,128) rule
    tb = min(tb_max, _round_up(pl.cdiv(batch, 2), 16))
    return max(tb, 16)


def _resident_spec(shape):
    """Weights/biases: constant index_map -> DMA'd once; single-buffered."""
    index_map = lambda i: (0, 0)
    try:
        return pl.BlockSpec(shape, index_map, pipeline_mode=pl.Buffered(1))
    except TypeError:  # older jax without pipeline_mode kwarg
        return pl.BlockSpec(shape, index_map)


# --------------------------------- kernel -----------------------------------

def _fused_proj_kernel(xb_ref, wb_ref, bb_ref, xm_ref, wm_ref, bm_ref,
                       ob_ref, om_ref):
    # xb: (TB, Db) f32, wb: (Db, S) bf16, bb: (1, S) f32  -> ob: (TB, S)
    # xm: (TB, Dm) f32, wm: (Dm, S) bf16, bm: (1, S) f32  -> om: (TB, S)
    # Cast activations to the weight dtype (bf16) in-kernel so HBM only ever
    # carries the f32 originals once; MXU accumulates in f32; bias add in f32.
    cd = wb_ref.dtype
    yb = jnp.dot(xb_ref[...].astype(cd), wb_ref[...],
                 preferred_element_type=jnp.float32)
    ob_ref[...] = (yb + bb_ref[...]).astype(ob_ref.dtype)

    ym = jnp.dot(xm_ref[...].astype(cd), wm_ref[...],
                 preferred_element_type=jnp.float32)
    om_ref[...] = (ym + bm_ref[...]).astype(om_ref.dtype)


@functools.partial(jax.jit, static_argnames=("block_b", "out_dtype"))
def fused_projection(xb, wb_t, bb, xm, wm_t, bm, *,
                     block_b=None, out_dtype=jnp.float32):
    """(xb @ wb_t + bb, xm @ wm_t + bm) in one fused Pallas call.

    wb_t / wm_t are torch-Linear weights transposed to (in, out), stored bf16.
    Activations are f32 (cast to bf16 inside the kernel); accumulation f32.
    """
    B, Db = xb.shape
    Dm = xm.shape[1]
    S = wb_t.shape[1]

    bb2 = bb.reshape(1, S).astype(jnp.float32)
    bm2 = bm.reshape(1, S).astype(jnp.float32)

    tb_max = block_b if block_b is not None else _DEFAULT_TB_MAX
    TB = _pick_batch_tile(B, tb_max)
    grid = (pl.cdiv(B, TB),)  # ragged last block handled by Pallas (no pad)

    in_itemsize = jnp.dtype(xb.dtype).itemsize
    w_itemsize = jnp.dtype(wb_t.dtype).itemsize
    out_itemsize = jnp.dtype(out_dtype).itemsize
    flops = 2 * B * (Db + Dm) * S
    bytes_accessed = (
        B * (Db + Dm) * in_itemsize        # activations (f32, read once)
        + (Db + Dm) * S * w_itemsize       # weights (bf16)
        + 2 * S * 4                        # biases (f32)
        + 2 * B * S * out_itemsize         # outputs
    )

    out_b, out_m = pl.pallas_call(
        _fused_proj_kernel,
        out_shape=(jax.ShapeDtypeStruct((B, S), out_dtype),
                   jax.ShapeDtypeStruct((B, S), out_dtype)),
        grid_spec=pl.GridSpec(
            grid=grid,
            in_specs=[
                pl.BlockSpec((TB, Db), lambda i: (i, 0)),   # bert x (tiled)
                _resident_spec((Db, S)),                    # bert W^T
                _resident_spec((1, S)),                     # bert bias
                pl.BlockSpec((TB, Dm), lambda i: (i, 0)),   # minilm x (tiled)
                _resident_spec((Dm, S)),                    # minilm W^T
                _resident_spec((1, S)),                     # minilm bias
            ],
            out_specs=(pl.BlockSpec((TB, S), lambda i: (i, 0)),
                       pl.BlockSpec((TB, S), lambda i: (i, 0))),
        ),
        compiler_params=pltpu.CompilerParams(
            dimension_semantics=("parallel",),   # shards batch across TCs (v7x)
            vmem_limit_bytes=_VMEM_LIMIT,
        ),
        cost_estimate=pl.CostEstimate(
            flops=flops, transcendentals=0, bytes_accessed=bytes_accessed),
    )(xb, wb_t, bb2, xm, wm_t, bm2)

    return out_b, out_m


# --------------------------------- module -----------------------------------

class ProjectionMapperPallas:
    """JAX/Pallas equivalent of the PyTorch ProjectionMapper forward pass."""

    def __init__(self, key, bert_dim=768, minilm_dim=384, shared_dim=512,
                 compute_dtype=jnp.bfloat16, xla_fallback_max_batch=0):
        k1, k2, k3, k4 = jax.random.split(key, 4)
        # Mimic nn.Linear uniform(-1/sqrt(fan_in), 1/sqrt(fan_in)) init.
        bb = 1.0 / jnp.sqrt(jnp.float32(bert_dim))
        mb = 1.0 / jnp.sqrt(jnp.float32(minilm_dim))
        # Transposed (in, out) weights in bf16; biases stay f32.
        self.bert_w_t = jax.random.uniform(
            k1, (bert_dim, shared_dim), jnp.float32, -bb, bb).astype(compute_dtype)
        self.bert_b = jax.random.uniform(k2, (shared_dim,), jnp.float32, -bb, bb)
        self.minilm_w_t = jax.random.uniform(
            k3, (minilm_dim, shared_dim), jnp.float32, -mb, mb).astype(compute_dtype)
        self.minilm_b = jax.random.uniform(k4, (shared_dim,), jnp.float32, -mb, mb)
        # Per perf review: at B <~ 128-256 the custom-call launch cost dwarfs
        # the work; set xla_fallback_max_batch (e.g. 128) to route tiny batches
        # through plain XLA dot+bias. Default 0 => always use the Pallas kernel
        # (so the demo below exercises it). Better still: batch requests.
        self.xla_fallback_max_batch = xla_fallback_max_batch

    def __call__(self, bert_embeddings, minilm_embeddings):
        if bert_embeddings.shape[0] <= self.xla_fallback_max_batch:
            yb = bert_embeddings @ self.bert_w_t.astype(jnp.float32) + self.bert_b
            ym = minilm_embeddings @ self.minilm_w_t.astype(jnp.float32) + self.minilm_b
            return yb, ym
        # out_dtype=f32 matches the PyTorch module; pass jnp.bfloat16 here to
        # halve output HBM traffic if downstream tolerates it.
        return fused_projection(bert_embeddings, self.bert_w_t, self.bert_b,
                                minilm_embeddings, self.minilm_w_t, self.minilm_b,
                                out_dtype=jnp.float32)


if __name__ == "__main__":
    key = jax.random.PRNGKey(0)
    k_params, k_bert, k_mini = jax.random.split(key, 3)

    batch = 8
    bert_dim, minilm_dim, shared_dim = 768, 384, 512

    mapper = ProjectionMapperPallas(k_params, bert_dim, minilm_dim, shared_dim)

    bert_embeddings = jax.random.normal(k_bert, (batch, bert_dim), jnp.float32)
    minilm_embeddings = jax.random.normal(k_mini, (batch, minilm_dim), jnp.float32)

    bert_shared, minilm_shared = mapper(bert_embeddings, minilm_embeddings)
    jax.block_until_ready((bert_shared, minilm_shared))

    # Reference (f32 activations x bf16 weights promoted to f32 + f32 bias).
    # Kernel rounds activations to bf16 for the MXU, hence the loose tolerance.
    ref_bert = bert_embeddings @ mapper.bert_w_t.astype(jnp.float32) + mapper.bert_b
    ref_mini = minilm_embeddings @ mapper.minilm_w_t.astype(jnp.float32) + mapper.minilm_b

    assert bert_shared.shape == (batch, shared_dim)
    assert minilm_shared.shape == (batch, shared_dim)
    assert bert_shared.dtype == jnp.float32
    assert minilm_shared.dtype == jnp.float32
    assert jnp.allclose(bert_shared, ref_bert, atol=2e-2, rtol=2e-2)
    assert jnp.allclose(minilm_shared, ref_mini, atol=2e-2, rtol=2e-2)

    print("KERNEL_OK")
</pallas_src>

<mosaic_0001>
module attributes {stable_mosaic.version = 11 : i64} {
  func.func @_fused_proj_kernel(%arg0: i32, %arg1: memref<8x768xf32, #tpu.memory_space<vmem>>, %arg2: memref<768x512xbf16, #tpu.memory_space<vmem>>, %arg3: memref<1x512xf32, #tpu.memory_space<vmem>>, %arg4: memref<8x384xf32, #tpu.memory_space<vmem>>, %arg5: memref<384x512xbf16, #tpu.memory_space<vmem>>, %arg6: memref<1x512xf32, #tpu.memory_space<vmem>>, %arg7: memref<8x512xf32, #tpu.memory_space<vmem>>, %arg8: memref<8x512xf32, #tpu.memory_space<vmem>>) attributes {dimension_semantics = [#tpu.dimension_semantics<parallel>], iteration_bounds = array<i64: 1>, scalar_prefetch = 0 : i64, scratch_operands = 0 : i64, tpu.core_type = #tpu.core_type<tc>, window_params = [{transform_indices = @transform_0, window_bounds = array<i64: 8, 768>}, {pipeline_mode = #tpu.pipeline_mode<synchronous>, transform_indices = @transform_1, window_bounds = array<i64: 768, 512>}, {pipeline_mode = #tpu.pipeline_mode<synchronous>, transform_indices = @transform_2, window_bounds = array<i64: 1, 512>}, {transform_indices = @transform_3, window_bounds = array<i64: 8, 384>}, {pipeline_mode = #tpu.pipeline_mode<synchronous>, transform_indices = @transform_4, window_bounds = array<i64: 384, 512>}, {pipeline_mode = #tpu.pipeline_mode<synchronous>, transform_indices = @transform_5, window_bounds = array<i64: 1, 512>}, {transform_indices = @transform_6, window_bounds = array<i64: 8, 512>}, {transform_indices = @transform_7, window_bounds = array<i64: 8, 512>}]} {
    %c0 = arith.constant 0 : index
    %c0_0 = arith.constant 0 : index
    %0 = vector.load %arg1[%c0, %c0_0] : memref<8x768xf32, #tpu.memory_space<vmem>>, vector<8x768xf32>
    %1 = arith.truncf %0 : vector<8x768xf32> to vector<8x768xbf16>
    %c0_1 = arith.constant 0 : index
    %c0_2 = arith.constant 0 : index
    %2 = vector.load %arg2[%c0_1, %c0_2] : memref<768x512xbf16, #tpu.memory_space<vmem>>, vector<768x512xbf16>
    %cst = arith.constant dense<0.000000e+00> : vector<8x512xf32>
    %3 = tpu.matmul %1, %2, %cst {dimension_numbers = #tpu.dot_dimension_numbers<[1], [0], [0], [1], [0, 0, 1, 1], [], []>} : vector<8x768xbf16>, vector<768x512xbf16>, vector<8x512xf32> -> vector<8x512xf32>
    %c0_3 = arith.constant 0 : index
    %c0_4 = arith.constant 0 : index
    %4 = vector.load %arg3[%c0_3, %c0_4] : memref<1x512xf32, #tpu.memory_space<vmem>>, vector<1x512xf32>
    %5 = vector.broadcast %4 : vector<1x512xf32> to vector<8x512xf32>
    %6 = arith.addf %3, %5 : vector<8x512xf32>
    %c0_5 = arith.constant 0 : index
    %c0_6 = arith.constant 0 : index
    %7 = vector.load %arg7[%c0_5, %c0_6] : memref<8x512xf32, #tpu.memory_space<vmem>>, vector<8x512xf32>
    tpu.vector_store %arg7[%c0_5, %c0_6], %6 {strides = array<i32>} : memref<8x512xf32, #tpu.memory_space<vmem>>, vector<8x512xf32>,
    %c0_7 = arith.constant 0 : index
    %c0_8 = arith.constant 0 : index
    %8 = vector.load %arg4[%c0_7, %c0_8] : memref<8x384xf32, #tpu.memory_space<vmem>>, vector<8x384xf32>
    %9 = arith.truncf %8 : vector<8x384xf32> to vector<8x384xbf16>
    %c0_9 = arith.constant 0 : index
    %c0_10 = arith.constant 0 : index
    %10 = vector.load %arg5[%c0_9, %c0_10] : memref<384x512xbf16, #tpu.memory_space<vmem>>, vector<384x512xbf16>
    %cst_11 = arith.constant dense<0.000000e+00> : vector<8x512xf32>
    %11 = tpu.matmul %9, %10, %cst_11 {dimension_numbers = #tpu.dot_dimension_numbers<[1], [0], [0], [1], [0, 0, 1, 1], [], []>} : vector<8x384xbf16>, vector<384x512xbf16>, vector<8x512xf32> -> vector<8x512xf32>
    %c0_12 = arith.constant 0 : index
    %c0_13 = arith.constant 0 : index
    %12 = vector.load %arg6[%c0_12, %c0_13] : memref<1x512xf32, #tpu.memory_space<vmem>>, vector<1x512xf32>
    %13 = vector.broadcast %12 : vector<1x512xf32> to vector<8x512xf32>
    %14 = arith.addf %11, %13 : vector<8x512xf32>
    %c0_14 = arith.constant 0 : index
    %c0_15 = arith.constant 0 : index
    %15 = vector.load %arg8[%c0_14, %c0_15] : memref<8x512xf32, #tpu.memory_space<vmem>>, vector<8x512xf32>
    tpu.vector_store %arg8[%c0_14, %c0_15], %14 {strides = array<i32>} : memref<8x512xf32, #tpu.memory_space<vmem>>, vector<8x512xf32>,
    return
  }
  func.func @transform_0(%arg0: i32) -> (i32, i32) {
    %c0_i32 = arith.constant 0 : i32
    %c0_i32_0 = arith.constant 0 : i32
    return %arg0, %c0_i32 : i32, i32
  }
  func.func @transform_1(%arg0: i32) -> (i32, i32) {
    %c0_i32 = arith.constant 0 : i32
    %c0_i32_0 = arith.constant 0 : i32
    %c0_i32_1 = arith.constant 0 : i32
    return %c0_i32, %c0_i32_0 : i32, i32
  }
  func.func @transform_2(%arg0: i32) -> (i32, i32) {
    %c0_i32 = arith.constant 0 : i32
    %c0_i32_0 = arith.constant 0 : i32
    %c0_i32_1 = arith.constant 0 : i32
    return %c0_i32, %c0_i32_0 : i32, i32
  }
  func.func @transform_3(%arg0: i32) -> (i32, i32) {
    %c0_i32 = arith.constant 0 : i32
    %c0_i32_0 = arith.constant 0 : i32
    return %arg0, %c0_i32 : i32, i32
  }
  func.func @transform_4(%arg0: i32) -> (i32, i32) {
    %c0_i32 = arith.constant 0 : i32
    %c0_i32_0 = arith.constant 0 : i32
    %c0_i32_1 = arith.constant 0 : i32
    return %c0_i32, %c0_i32_0 : i32, i32
  }
  func.func @transform_5(%arg0: i32) -> (i32, i32) {
    %c0_i32 = arith.constant 0 : i32
    %c0_i32_0 = arith.constant 0 : i32
    %c0_i32_1 = arith.constant 0 : i32
    return %c0_i32, %c0_i32_0 : i32, i32
  }
  func.func @transform_6(%arg0: i32) -> (i32, i32) {
    %c0_i32 = arith.constant 0 : i32
    %c0_i32_0 = arith.constant 0 : i32
    return %arg0, %c0_i32 : i32, i32
  }
  func.func @transform_7(%arg0: i32) -> (i32, i32) {
    %c0_i32 = arith.constant 0 : i32
    %c0_i32_0 = arith.constant 0 : i32
    return %arg0, %c0_i32 : i32, i32
  }
}

</mosaic_0001>

<bundles_post_ra>
// kernel: fused_projection.1
= control target key start
LH: loop header
LB: loop body
LE: loop exit
PB: predicated region body
PF: predicated region fallthrough
CT: control target
= control target key end

     0   :  { %13 = vsyncpa [#allocation3], 0  ;;  %s3354_s0 = inlined_call_operand.hbm [shape: f32[8,768], index: 0, kind: input, shape index: {}]   ;;  %s3355_s1 = inlined_call_operand.hbm [shape: bf16[768,512], index: 1, kind: input, shape index: {}]   ;;  %s3356_s2 = inlined_call_operand.vmem [shape: f32[1,512], index: 2, kind: input, shape index: {}]   ;;  %s3357_s3 = inlined_call_operand.hbm [shape: f32[8,384], index: 3, kind: input, shape index: {}]   ;;  %s3358_s4 = inlined_call_operand.hbm [shape: bf16[384,512], index: 4, kind: input, shape index: {}]   ;;  %s3359_s5 = inlined_call_operand.vmem [shape: f32[1,512], index: 5, kind: input, shape index: {}]   ;;  %s3360_s6 = inlined_call_operand.hbm [shape: f32[8,512], index: 6, kind: output, shape index: {0}]   ;;  %s3361_s7 = inlined_call_operand.hbm [shape: f32[8,512], index: 7, kind: output, shape index: {1}]  }
   0x1   :  { %14 = vsyncpa [#allocation6], 0 }
   0x2   :  { %15 = vsyncpa [#allocation9], 0 }
   0x3   :  { %16 = vsyncpa [#allocation4], 0 }
   0x4   :  { %17 = vsyncpa [#allocation12], 0  ;;  %s3221_s24 = smov [#allocation5]   ;;  %s3079_s28 = scalar_lea.hbm %s3355_s1, 24576 }
   0x5   :  { %s33_s25 = sshll.u32 %s3221_s24, 4  ;;  %p3080_p0 = scmp.ne.s32.totalorder %s3355_s1, %s3079_s28  ;;  %s34_s25 = int_to_ptr.vmem [resolvable:$true] %s33_s25 }
   0x6   :  { %p3083_p1 = scmp.lt.u32.totalorder %s3079_s28, %s3355_s1 }
   0x8   :  { %p3085_p2 = pnand %p3083_p1, %p3080_p0 }
   0xa   :  { %3088 = shalt.err (!%p3085_p2)
}
   0xb   :  { %s3089_s10 = scalar_lea.vmem %s34_s25, 24576  ;;  %p3094_p4 = scmp.lt.s32.totalorder %s34_s25, %s34_s25 }
   0xc   :  { %p3090_p3 = scmp.ne.s32.totalorder %s34_s25, %s3089_s10  ;;  %p3095_p5 = scmp.lt.s32.totalorder %s3089_s10, %s3089_s10 }
   0xe   :  { %p3096_p6 = por %p3095_p5, %p3094_p4 }
  0x10   :  { %p3097_p7 = pnand %p3096_p6, %p3090_p3 }
  0x12   :  { %3100 = shalt.err (!%p3097_p7)
}
  0x13   :  { %s3222_s11 = smov 256   ;;  %s3223_s12 = smov 16  }
  0x14   :  { %39 = dma.hbm_to_vmem [thread:$0]  %s3355_s1, 24576, %s34_s25, [#allocation6], %s3222_s11, %s3222_s11, %s3223_s12  }
  0x15   :  { %s3224_s15 = smov [#allocation2]   ;;  %s3225_s17 = smov [#allocation7]  }
  0x16   :  { %s24_s16 = sshll.u32 %s3224_s15, 4  ;;  %s48_s18 = sshll.u32 %s3225_s17, 4  ;;  %s25_s16 = int_to_ptr.vmem [resolvable:$true] %s24_s16  ;;  %s49_s18 = int_to_ptr.vmem [resolvable:$true] %s48_s18 }
  0x17   :  { %s3101_s21 = scalar_lea.hbm %s3354_s0, 768 }
  0x18   :  { %p3102_p8 = scmp.ne.s32.totalorder %s3354_s0, %s3101_s21  ;;  %p3105_p9 = scmp.lt.u32.totalorder %s3101_s21, %s3354_s0 }
  0x1a   :  { %p3107_p10 = pnand %p3105_p9, %p3102_p8 }
  0x1c   :  { %3110 = shalt.err (!%p3107_p10)
}
  0x1d   :  { %s3111_s1 = scalar_lea.vmem %s25_s16, 768  ;;  %p3116_p12 = scmp.lt.s32.totalorder %s25_s16, %s25_s16 }
  0x1e   :  { %p3112_p11 = scmp.ne.s32.totalorder %s25_s16, %s3111_s1  ;;  %p3117_p13 = scmp.lt.s32.totalorder %s3111_s1, %s3111_s1 }
  0x20   :  { %p3118_p0 = por %p3117_p13, %p3116_p12 }
  0x22   :  { %p3119_p1 = pnand %p3118_p0, %p3112_p11 }
  0x24   :  { %3122 = shalt.err (!%p3119_p1)
}
  0x25   :  { %27 = dma.hbm_to_vmem [thread:$0]  %s3354_s0, 768, %s25_s16, [#allocation3]  }
  0x26   :  { %s3123_s30 = scalar_lea.hbm %s3357_s3, 384 }
  0x27   :  { %p3124_p2 = scmp.ne.s32.totalorder %s3357_s3, %s3123_s30  ;;  %p3127_p3 = scmp.lt.u32.totalorder %s3123_s30, %s3357_s3 }
  0x29   :  { %p3129_p4 = pnand %p3127_p3, %p3124_p2 }
  0x2b   :  { %3132 = shalt.err (!%p3129_p4)
}
  0x2c   :  { %s3133_s14 = scalar_lea.vmem %s49_s18, 384  ;;  %p3138_p6 = scmp.lt.s32.totalorder %s49_s18, %s49_s18 }
  0x2d   :  { %p3134_p5 = scmp.ne.s32.totalorder %s49_s18, %s3133_s14  ;;  %p3139_p7 = scmp.lt.s32.totalorder %s3133_s14, %s3133_s14 }
  0x2f   :  { %p3140_p8 = por %p3139_p7, %p3138_p6 }
  0x31   :  { %p3141_p9 = pnand %p3140_p8, %p3134_p5 }
  0x33   :  { %3144 = shalt.err (!%p3141_p9)
}
  0x34   :  { %51 = dma.hbm_to_vmem [thread:$0]  %s3357_s3, 384, %s49_s18, [#allocation6]  }
  0x35   :  { %s3226_s16 = smov [#allocation8]   ;;  %s3145_s21 = scalar_lea.hbm %s3358_s4, 12288 }
  0x36   :  { %s57_s17 = sshll.u32 %s3226_s16, 4  ;;  %p3146_p10 = scmp.ne.s32.totalorder %s3358_s4, %s3145_s21  ;;  %s58_s17 = int_to_ptr.vmem [resolvable:$true] %s57_s17 }
  0x37   :  { %p3149_p11 = scmp.lt.u32.totalorder %s3145_s21, %s3358_s4 }
  0x39   :  { %p3151_p12 = pnand %p3149_p11, %p3146_p10 }
  0x3b   :  { %3154 = shalt.err (!%p3151_p12)
}
  0x3c   :  { %s3155_s1 = scalar_lea.vmem %s58_s17, 12288  ;;  %p3160_p0 = scmp.lt.s32.totalorder %s58_s17, %s58_s17 }
  0x3d   :  { %p3156_p13 = scmp.ne.s32.totalorder %s58_s17, %s3155_s1  ;;  %p3161_p1 = scmp.lt.s32.totalorder %s3155_s1, %s3155_s1 }
  0x3f   :  { %p3162_p2 = por %p3161_p1, %p3160_p0 }
  0x41   :  { %p3163_p3 = pnand %p3162_p2, %p3156_p13 }
  0x43   :  { %3166 = shalt.err (!%p3163_p3)
}
  0x44   :  { %63 = dma.hbm_to_vmem [thread:$0]  %s3358_s4, 12288, %s58_s17, [#allocation9], %s3222_s11, %s3222_s11, %s3223_s12  }
  0x45   :  { %3211 = dma.done.wait [#allocation3], 768  }
  0x46   :  { %3212 = vsyncadd [#allocation3], 4294966528 }
  0x47   :  { %3213 = dma.done.wait [#allocation6], 24960  }
  0x48   :  { %3214 = vsyncadd [#allocation6], 4294942336 }
  0x49   :  { %3215 = dma.done.wait [#allocation9], 12288  }
  0x4a   :  { %3216 = vsyncadd [#allocation9], 4294955008  ;;  %v2647_v0 = vld [vmem:[#allocation5 + $0x4] ss:$16 sps:$4 sm:$0xff]   ;;  %v2649_v1 = vld [vmem:[#allocation5 + $0xc] ss:$16 sps:$4 sm:$0xff]  }
  0x4b   :  { %1265 = vmatprep.subr.bf16.mxu0 %v2647_v0  ;;  %v2651_v2 = vld [vmem:[#allocation5] ss:$16 sps:$4 sm:$0xff]   ;;  %v2652_v3 = vld [vmem:[#allocation5 + $0x8] ss:$16 sps:$4 sm:$0xff]   ;;  %1388 = vmatprep.subr.bf16.mxu1 %v2649_v1  ;;  %v2653_v4 = vld [vmem:[#allocation5 + $0x24] ss:$16 sps:$4 sm:$0xff]  }
  0x4c   :  { %1266 = vmatpush1.bf16.msra.mxu0 %v2651_v2  ;;  %1389 = vmatpush1.bf16.msra.mxu1 %v2652_v3  ;;  %v2655_v5 = vld [vmem:[#allocation5 + $0x2c] ss:$16 sps:$4 sm:$0xff]   ;;  %v2657_v6 = vld [vmem:[#allocation5 + $0x20] ss:$16 sps:$4 sm:$0xff]   ;;  %v2658_v7 = vld [vmem:[#allocation5 + $0x28] ss:$16 sps:$4 sm:$0xff]  }
  0x4d   :  { %1267 = vmatprep.subr.bf16.mxu0 %v2653_v4  ;;  %1390 = vmatprep.subr.bf16.mxu1 %v2655_v5  ;;  %v2659_v8 = vld [vmem:[#allocation5 + $0x44] ss:$16 sps:$4 sm:$0xff]   ;;  %v2661_v9 = vld [vmem:[#allocation5 + $0x4c] ss:$16 sps:$4 sm:$0xff]   ;;  %v2663_v10 = vld [vmem:[#allocation5 + $0x40] ss:$16 sps:$4 sm:$0xff]  }
  0x4e   :  { %v2664_v11 = vld [vmem:[#allocation5 + $0x48] ss:$16 sps:$4 sm:$0xff]   ;;  %v2665_v12 = vld [vmem:[#allocation5 + $0x64] ss:$16 sps:$4 sm:$0xff]   ;;  %v2667_v13 = vld [vmem:[#allocation5 + $0x6c] ss:$16 sps:$4 sm:$0xff]  }
  0x4f   :  { %v2669_v14 = vld [vmem:[#allocation5 + $0x60] ss:$16 sps:$4 sm:$0xff]   ;;  %v2670_v15 = vld [vmem:[#allocation5 + $0x68] ss:$16 sps:$4 sm:$0xff]   ;;  %v2671_v16 = vld [vmem:[#allocation5 + $0x84] ss:$16 sps:$4 sm:$0xff]  }
  0x50   :  { %1268 = vmatpush1.bf16.msra.mxu0 %v2657_v6  ;;  %1391 = vmatpush1.bf16.msra.mxu1 %v2658_v7  ;;  %v2673_v17 = vld [vmem:[#allocation5 + $0x8c] ss:$16 sps:$4 sm:$0xff]   ;;  %v2675_v18 = vld [vmem:[#allocation5 + $0x80] ss:$16 sps:$4 sm:$0xff]   ;;  %v2676_v19 = vld [vmem:[#allocation5 + $0x88] ss:$16 sps:$4 sm:$0xff]  }
  0x51   :  { %1269 = vmatprep.subr.bf16.mxu0 %v2659_v8  ;;  %1392 = vmatprep.subr.bf16.mxu1 %v2661_v9  ;;  %v2677_v20 = vld [vmem:[#allocation5 + $0xa4] ss:$16 sps:$4 sm:$0xff]   ;;  %v2679_v21 = vld [vmem:[#allocation5 + $0xac] ss:$16 sps:$4 sm:$0xff]   ;;  %v2681_v22 = vld [vmem:[#allocation5 + $0xa0] ss:$16 sps:$4 sm:$0xff]  }
  0x52   :  { %v2682_v23 = vld [vmem:[#allocation5 + $0xa8] ss:$16 sps:$4 sm:$0xff]   ;;  %v2683_v24 = vld [vmem:[#allocation5 + $0xc4] ss:$16 sps:$4 sm:$0xff]   ;;  %v2685_v25 = vld [vmem:[#allocation5 + $0xcc] ss:$16 sps:$4 sm:$0xff]  }
  0x53   :  { %v2687_v26 = vld [vmem:[#allocation5 + $0xc0] ss:$16 sps:$4 sm:$0xff]   ;;  %v2688_v27 = vld [vmem:[#allocation5 + $0xc8] ss:$16 sps:$4 sm:$0xff]   ;;  %v2689_v28 = vld [vmem:[#allocation5 + $0xe4] ss:$16 sps:$4 sm:$0xff]  }
  0x54   :  { %1270 = vmatpush1.bf16.msra.mxu0 %v2663_v10  ;;  %1393 = vmatpush1.bf16.msra.mxu1 %v2664_v11  ;;  %v2691_v29 = vld [vmem:[#allocation5 + $0xec] ss:$16 sps:$4 sm:$0xff]   ;;  %v2693_v30 = vld [vmem:[#allocation5 + $0xe0] ss:$16 sps:$4 sm:$0xff]   ;;  %v2694_v31 = vld [vmem:[#allocation5 + $0xe8] ss:$16 sps:$4 sm:$0xff]  }
  0x55   :  { %1271 = vmatprep.subr.bf16.mxu0 %v2665_v12  ;;  %1394 = vmatprep.subr.bf16.mxu1 %v2667_v13  ;;  %v2695_v32 = vld [vmem:[#allocation5 + $0x104] ss:$16 sps:$4 sm:$0xff]   ;;  %v2697_v33 = vld [vmem:[#allocation5 + $0x10c] ss:$16 sps:$4 sm:$0xff]   ;;  %v2699_v34 = vld [vmem:[#allocation5 + $0x100] ss:$16 sps:$4 sm:$0xff]  }
  0x56   :  { %v2700_v35 = vld [vmem:[#allocation5 + $0x108] ss:$16 sps:$4 sm:$0xff]   ;;  %v2701_v36 = vld [vmem:[#allocation5 + $0x124] ss:$16 sps:$4 sm:$0xff]   ;;  %v2703_v37 = vld [vmem:[#allocation5 + $0x12c] ss:$16 sps:$4 sm:$0xff]  }
  0x57   :  { %v2705_v38 = vld [vmem:[#allocation5 + $0x120] ss:$16 sps:$4 sm:$0xff]   ;;  %v2706_v39 = vld [vmem:[#allocation5 + $0x128] ss:$16 sps:$4 sm:$0xff]   ;;  %v2707_v40 = vld [vmem:[#allocation5 + $0x144] ss:$16 sps:$4 sm:$0xff]  }
  0x58   :  { %1272 = vmatpush1.bf16.msra.mxu0 %v2669_v14  ;;  %1395 = vmatpush1.bf16.msra.mxu1 %v2670_v15  ;;  %v2709_v41 = vld [vmem:[#allocation5 + $0x14c] ss:$16 sps:$4 sm:$0xff]   ;;  %v2711_v42 = vld [vmem:[#allocation5 + $0x140] ss:$16 sps:$4 sm:$0xff]   ;;  %v2712_v43 = vld [vmem:[#allocation5 + $0x148] ss:$16 sps:$4 sm:$0xff]  }
  0x59   :  { %1273 = vmatprep.subr.bf16.mxu0 %v2671_v16  ;;  %1396 = vmatprep.subr.bf16.mxu1 %v2673_v17  ;;  %v2713_v44 = vld [vmem:[#allocation5 + $0x164] ss:$16 sps:$4 sm:$0xff]   ;;  %v2715_v45 = vld [vmem:[#allocation5 + $0x16c] ss:$16 sps:$4 sm:$0xff]   ;;  %v2717_v47 = vld [vmem:[#allocation5 + $0x160] ss:$16 sps:$4 sm:$0xff]  }
  0x5a   :  { %v80_v46 = vld [vmem:[#allocation2 + $0x8] sm:$0xff]  ;;  %v2719_v50 = vld [vmem:[#allocation5 + $0x184] ss:$16 sps:$4 sm:$0xff]   ;;  %v2723_v52 = vld [vmem:[#allocation5 + $0x180] ss:$16 sps:$4 sm:$0xff]   ;;  %s3228_s12 = smov [#allocation10]  }
  0x5b   :  { %v86_v48 = vpack.c.bf16 %v80_v46, %v80_v46  ;;  %v2718_v49 = vld [vmem:[#allocation5 + $0x168] ss:$16 sps:$4 sm:$0xff]   ;;  %v2721_v51 = vld [vmem:[#allocation5 + $0x18c] ss:$16 sps:$4 sm:$0xff]   ;;  %v2725_v54 = vld [vmem:[#allocation5 + $0x1a4] ss:$16 sps:$4 sm:$0xff]  }
  0x5c   :  { %1274 = vmatpush1.bf16.msra.mxu0 %v2675_v18  ;;  %1397 = vmatpush1.bf16.msra.mxu1 %v2676_v19  ;;  %v2724_v53 = vld [vmem:[#allocation5 + $0x188] ss:$16 sps:$4 sm:$0xff]   ;;  %v2727_v55 = vld [vmem:[#allocation5 + $0x1ac] ss:$16 sps:$4 sm:$0xff]   ;;  %v2729_v56 = vld [vmem:[#allocation5 + $0x1a0] ss:$16 sps:$4 sm:$0xff]  }
  0x5d   :  { %1275 = vmatprep.subr.bf16.mxu0 %v2677_v20  ;;  %1398 = vmatprep.subr.bf16.mxu1 %v2679_v21  ;;  %v2730_v57 = vld [vmem:[#allocation5 + $0x1a8] ss:$16 sps:$4 sm:$0xff]   ;;  %v2731_v58 = vld [vmem:[#allocation5 + $0x1c4] ss:$16 sps:$4 sm:$0xff]   ;;  %v2733_v59 = vld [vmem:[#allocation5 + $0x1cc] ss:$16 sps:$4 sm:$0xff]  }
  0x5e   :  { %1297 = vmatprep.mubr.bf16.mxu0 %v86_v48  ;;  %1420 = vmatprep.mubr.bf16.mxu1 %v86_v48  ;;  %v2735_v60 = vld [vmem:[#allocation5 + $0x1c0] ss:$16 sps:$4 sm:$0xff]   ;;  %v2736_v61 = vld [vmem:[#allocation5 + $0x1c8] ss:$16 sps:$4 sm:$0xff]   ;;  %v2737_v62 = vld [vmem:[#allocation5 + $0x1e4] ss:$16 sps:$4 sm:$0xff]  }
  0x5f   :  { %v2739_v63 = vld [vmem:[#allocation5 + $0x1ec] ss:$16 sps:$4 sm:$0xff]   ;;  %v2741_v0 = vld [vmem:[#allocation5 + $0x1e0] ss:$16 sps:$4 sm:$0xff]   ;;  %v2742_v1 = vld [vmem:[#allocation5 + $0x1e8] ss:$16 sps:$4 sm:$0xff]  }
  0x60   :  { %1276 = vmatpush1.bf16.msra.mxu0 %v2681_v22  ;;  %1399 = vmatpush1.bf16.msra.mxu1 %v2682_v23  ;;  %v79_v2 = vld [vmem:[#allocation2] sm:$0xff]  ;;  %v2748_v4 = vld [vmem:[#allocation5 + $0x20c] ss:$16 sps:$4 sm:$0xff]   ;;  %v2746_v7 = vld [vmem:[#allocation5 + $0x208] ss:$16 sps:$4 sm:$0xff]   ;;  %s2293_s25 = sshll.u32 %s3228_s12, 4  ;;  %s2294_s25 = int_to_ptr.vmem [resolvable:$true] %s2293_s25 }
  0x61   :  { %1277 = vmatprep.subr.bf16.mxu0 %v2683_v24  ;;  %1400 = vmatprep.subr.bf16.mxu1 %v2685_v25  ;;  %v2745_v3 = vld [vmem:[#allocation5 + $0x204] ss:$16 sps:$4 sm:$0xff]   ;;  %v85_v5 = vpack.c.bf16 %v79_v2, %v79_v2  ;;  %v2743_v6 = vld [vmem:[#allocation5 + $0x200] ss:$16 sps:$4 sm:$0xff]   ;;  %v2754_v9 = vld [vmem:[#allocation5 + $0x22c] ss:$16 sps:$4 sm:$0xff]   ;;  %p3172_p5 = scmp.lt.s32.totalorder %s2294_s25, %s2294_s25 }
  0x62   :  { %v2751_v8 = vld [vmem:[#allocation5 + $0x224] ss:$16 sps:$4 sm:$0xff]   ;;  %v2749_v10 = vld [vmem:[#allocation5 + $0x220] ss:$16 sps:$4 sm:$0xff]   ;;  %v2752_v11 = vld [vmem:[#allocation5 + $0x228] ss:$16 sps:$4 sm:$0xff]  }
  0x63   :  { %v2757_v12 = vld [vmem:[#allocation5 + $0x244] ss:$16 sps:$4 sm:$0xff]   ;;  %v2760_v13 = vld [vmem:[#allocation5 + $0x24c] ss:$16 sps:$4 sm:$0xff]   ;;  %v2755_v14 = vld [vmem:[#allocation5 + $0x240] ss:$16 sps:$4 sm:$0xff]  }
  0x64   :  { %1278 = vmatpush1.bf16.msra.mxu0 %v2687_v26  ;;  %1401 = vmatpush1.bf16.msra.mxu1 %v2688_v27  ;;  %v2758_v15 = vld [vmem:[#allocation5 + $0x248] ss:$16 sps:$4 sm:$0xff]   ;;  %v2763_v16 = vld [vmem:[#allocation5 + $0x264] ss:$16 sps:$4 sm:$0xff]   ;;  %v2766_v17 = vld [vmem:[#allocation5 + $0x26c] ss:$16 sps:$4 sm:$0xff]  }
  0x65   :  { %1279 = vmatprep.subr.bf16.mxu0 %v2689_v28  ;;  %1402 = vmatprep.subr.bf16.mxu1 %v2691_v29  ;;  %v2761_v18 = vld [vmem:[#allocation5 + $0x260] ss:$16 sps:$4 sm:$0xff]   ;;  %v2764_v19 = vld [vmem:[#allocation5 + $0x268] ss:$16 sps:$4 sm:$0xff]   ;;  %v2769_v20 = vld [vmem:[#allocation5 + $0x284] ss:$16 sps:$4 sm:$0xff]  }
  0x66   :  { %v2772_v21 = vld [vmem:[#allocation5 + $0x28c] ss:$16 sps:$4 sm:$0xff]   ;;  %v2767_v22 = vld [vmem:[#allocation5 + $0x280] ss:$16 sps:$4 sm:$0xff]   ;;  %v2770_v23 = vld [vmem:[#allocation5 + $0x288] ss:$16 sps:$4 sm:$0xff]  }
  0x67   :  { %v2775_v24 = vld [vmem:[#allocation5 + $0x2a4] ss:$16 sps:$4 sm:$0xff]   ;;  %v2778_v25 = vld [vmem:[#allocation5 + $0x2ac] ss:$16 sps:$4 sm:$0xff]   ;;  %v2773_v26 = vld [vmem:[#allocation5 + $0x2a0] ss:$16 sps:$4 sm:$0xff]  }
  0x68   :  { %1280 = vmatpush1.bf16.msra.mxu0 %v2693_v30  ;;  %1403 = vmatpush1.bf16.msra.mxu1 %v2694_v31  ;;  %v2776_v27 = vld [vmem:[#allocation5 + $0x2a8] ss:$16 sps:$4 sm:$0xff]   ;;  %v2781_v28 = vld [vmem:[#allocation5 + $0x2c4] ss:$16 sps:$4 sm:$0xff]   ;;  %v2784_v29 = vld [vmem:[#allocation5 + $0x2cc] ss:$16 sps:$4 sm:$0xff]  }
  0x69   :  { %1281 = vmatprep.subr.bf16.mxu0 %v2695_v32  ;;  %1404 = vmatprep.subr.bf16.mxu1 %v2697_v33  ;;  %v82_v30 = vld [vmem:[#allocation2 + $0x18] sm:$0xff]  ;;  %v2779_v31 = vld [vmem:[#allocation5 + $0x2c0] ss:$16 sps:$4 sm:$0xff]   ;;  %v2805_v46 = vld [vmem:[#allocation5 + $0x344] ss:$16 sps:$4 sm:$0xff]  }
  0x6a   :  { %v88_v32 = vpack.c.bf16 %v82_v30, %v82_v30  ;;  %v2782_v33 = vld [vmem:[#allocation5 + $0x2c8] ss:$16 sps:$4 sm:$0xff]   ;;  %v2803_v48 = vld [vmem:[#allocation5 + $0x340] ss:$16 sps:$4 sm:$0xff]   ;;  %v2835_v2 = vld [vmem:[#allocation5 + $0x3e4] ss:$16 sps:$4 sm:$0xff]  }
  0x6b   :  { %v2871_v30 = vld [vmem:[#allocation5 + $0x4a4] ss:$16 sps:$4 sm:$0xff]  }
  0x6c   :  { %1282 = vmatpush1.bf16.msra.mxu0 %v2699_v34  ;;  %1405 = vmatpush1.bf16.msra.mxu1 %v2700_v35  ;;  %v2787_v34 = vld [vmem:[#allocation5 + $0x2e4] ss:$16 sps:$4 sm:$0xff]   ;;  %v2790_v35 = vld [vmem:[#allocation5 + $0x2ec] ss:$16 sps:$4 sm:$0xff]  }
  0x6d   :  { %1283 = vmatprep.subr.bf16.mxu0 %v2701_v36  ;;  %1406 = vmatprep.subr.bf16.mxu1 %v2703_v37  ;;  %v2785_v36 = vld [vmem:[#allocation5 + $0x2e0] ss:$16 sps:$4 sm:$0xff]   ;;  %v2788_v37 = vld [vmem:[#allocation5 + $0x2e8] ss:$16 sps:$4 sm:$0xff]  }
  0x70   :  { %1284 = vmatpush1.bf16.msra.mxu0 %v2705_v38  ;;  %1407 = vmatpush1.bf16.msra.mxu1 %v2706_v39  ;;  %v2793_v38 = vld [vmem:[#allocation5 + $0x304] ss:$16 sps:$4 sm:$0xff]   ;;  %v2796_v39 = vld [vmem:[#allocation5 + $0x30c] ss:$16 sps:$4 sm:$0xff]  }
  0x71   :  { %1285 = vmatprep.subr.bf16.mxu0 %v2707_v40  ;;  %1408 = vmatprep.subr.bf16.mxu1 %v2709_v41  ;;  %v2791_v40 = vld [vmem:[#allocation5 + $0x300] ss:$16 sps:$4 sm:$0xff]   ;;  %v2794_v41 = vld [vmem:[#allocation5 + $0x308] ss:$16 sps:$4 sm:$0xff]  }
  0x74   :  { %1286 = vmatpush1.bf16.msra.mxu0 %v2711_v42  ;;  %1409 = vmatpush1.bf16.msra.mxu1 %v2712_v43  ;;  %v2799_v42 = vld [vmem:[#allocation5 + $0x324] ss:$16 sps:$4 sm:$0xff]   ;;  %v2802_v43 = vld [vmem:[#allocation5 + $0x32c] ss:$16 sps:$4 sm:$0xff]  }
  0x75   :  { %1287 = vmatprep.subr.bf16.mxu0 %v2713_v44  ;;  %1410 = vmatprep.subr.bf16.mxu1 %v2715_v45  ;;  %v2797_v44 = vld [vmem:[#allocation5 + $0x320] ss:$16 sps:$4 sm:$0xff]   ;;  %v2800_v45 = vld [vmem:[#allocation5 + $0x328] ss:$16 sps:$4 sm:$0xff]  }
  0x78   :  { %1288 = vmatpush1.bf16.msra.mxu0 %v2717_v47  ;;  %1411 = vmatpush1.bf16.msra.mxu1 %v2718_v49  ;;  %v2808_v47 = vld [vmem:[#allocation5 + $0x34c] ss:$16 sps:$4 sm:$0xff]   ;;  %v2806_v49 = vld [vmem:[#allocation5 + $0x348] ss:$16 sps:$4 sm:$0xff]  }
  0x79   :  { %1289 = vmatprep.subr.bf16.mxu0 %v2719_v50  ;;  %1412 = vmatprep.subr.bf16.mxu1 %v2721_v51  ;;  %v2811_v50 = vld [vmem:[#allocation5 + $0x364] ss:$16 sps:$4 sm:$0xff]   ;;  %v2814_v51 = vld [vmem:[#allocation5 + $0x36c] ss:$16 sps:$4 sm:$0xff]  }
  0x7c   :  { %1290 = vmatpush1.bf16.msra.mxu0 %v2723_v52  ;;  %1413 = vmatpush1.bf16.msra.mxu1 %v2724_v53  ;;  %v2809_v52 = vld [vmem:[#allocation5 + $0x360] ss:$16 sps:$4 sm:$0xff]   ;;  %v2812_v53 = vld [vmem:[#allocation5 + $0x368] ss:$16 sps:$4 sm:$0xff]  }
  0x7d   :  { %1291 = vmatprep.subr.bf16.mxu0 %v2725_v54  ;;  %1414 = vmatprep.subr.bf16.mxu1 %v2727_v55  ;;  %v2817_v54 = vld [vmem:[#allocation5 + $0x384] ss:$16 sps:$4 sm:$0xff]   ;;  %v2820_v55 = vld [vmem:[#allocation5 + $0x38c] ss:$16 sps:$4 sm:$0xff]  }
  0x80   :  { %1292 = vmatpush1.bf16.msra.mxu0 %v2729_v56  ;;  %1415 = vmatpush1.bf16.msra.mxu1 %v2730_v57  ;;  %v2815_v56 = vld [vmem:[#allocation5 + $0x380] ss:$16 sps:$4 sm:$0xff]   ;;  %v2818_v57 = vld [vmem:[#allocation5 + $0x388] ss:$16 sps:$4 sm:$0xff]  }
  0x81   :  { %1293 = vmatprep.subr.bf16.mxu0 %v2731_v58  ;;  %1416 = vmatprep.subr.bf16.mxu1 %v2733_v59  ;;  %v2823_v58 = vld [vmem:[#allocation5 + $0x3a4] ss:$16 sps:$4 sm:$0xff]   ;;  %v2826_v59 = vld [vmem:[#allocation5 + $0x3ac] ss:$16 sps:$4 sm:$0xff]  }
  0x84   :  { %1294 = vmatpush1.bf16.msra.mxu0 %v2735_v60  ;;  %1417 = vmatpush1.bf16.msra.mxu1 %v2736_v61  ;;  %v2821_v60 = vld [vmem:[#allocation5 + $0x3a0] ss:$16 sps:$4 sm:$0xff]   ;;  %v2824_v61 = vld [vmem:[#allocation5 + $0x3a8] ss:$16 sps:$4 sm:$0xff]  }
  0x85   :  { %1295 = vmatprep.subr.bf16.mxu0 %v2737_v62  ;;  %1418 = vmatprep.subr.bf16.mxu1 %v2739_v63  ;;  %v2829_v62 = vld [vmem:[#allocation5 + $0x3c4] ss:$16 sps:$4 sm:$0xff]   ;;  %v2832_v63 = vld [vmem:[#allocation5 + $0x3cc] ss:$16 sps:$4 sm:$0xff]  }
  0x88   :  { %1296 = vmatpush1.bf16.msra.mxu0 %v2741_v0  ;;  %1419 = vmatpush1.bf16.msra.mxu1 %v2742_v1  ;;  %v2827_v0 = vld [vmem:[#allocation5 + $0x3c0] ss:$16 sps:$4 sm:$0xff]   ;;  %v2830_v1 = vld [vmem:[#allocation5 + $0x3c8] ss:$16 sps:$4 sm:$0xff]  }
  0x89   :  { %1306 = vmatprep.subr.bf16.mxu0 %v2745_v3  ;;  %1429 = vmatprep.subr.bf16.mxu1 %v2748_v4  ;;  %v2838_v3 = vld [vmem:[#allocation5 + $0x3ec] ss:$16 sps:$4 sm:$0xff]   ;;  %v2833_v4 = vld [vmem:[#allocation5 + $0x3e0] ss:$16 sps:$4 sm:$0xff]  }
  0x8b   :  { %1298 = vmatmul.mubr.bf16.vlgmr.msra.gmra.mrb[0].mxu0 %v85_v5  ;;  %1421 = vmatmul.mubr.bf16.vlgmr.msra.gmra.mrb[0].mxu1 %v85_v5  ;;  %v2836_v5 = vld [vmem:[#allocation5 + $0x3e8] ss:$16 sps:$4 sm:$0xff]  }
  0x8c   :  { %1307 = vmatpush1.bf16.msra.mxu0 %v2743_v6  ;;  %1430 = vmatpush1.bf16.msra.mxu1 %v2746_v7  ;;  %v2841_v6 = vld [vmem:[#allocation5 + $0x404] ss:$16 sps:$4 sm:$0xff]  }
  0x8d   :  { %1308 = vmatprep.subr.bf16.mxu0 %v2751_v8  ;;  %1431 = vmatprep.subr.bf16.mxu1 %v2754_v9  ;;  %v81_v7 = vld [vmem:[#allocation2 + $0x10] sm:$0xff]  ;;  %v2844_v8 = vld [vmem:[#allocation5 + $0x40c] ss:$16 sps:$4 sm:$0xff]  }
  0x8e   :  { %1338 = vmatprep.mubr.bf16.mxu0 %v88_v32  ;;  %1461 = vmatprep.mubr.bf16.mxu1 %v88_v32  ;;  %v2839_v9 = vld [vmem:[#allocation5 + $0x400] ss:$16 sps:$4 sm:$0xff]  }
  0x8f   :  { %v2869_v32 = vld [vmem:[#allocation5 + $0x4a0] ss:$16 sps:$4 sm:$0xff]  }
  0x90   :  { %1309 = vmatpush1.bf16.msra.mxu0 %v2749_v10  ;;  %1432 = vmatpush1.bf16.msra.mxu1 %v2752_v11  ;;  %v87_v10 = vpack.c.bf16 %v81_v7, %v81_v7  ;;  %v2842_v11 = vld [vmem:[#allocation5 + $0x408] ss:$16 sps:$4 sm:$0xff]   ;;  %v2934_v7 = vld [vmem:[#allocation5 + $0x5ec] ss:$16 sps:$4 sm:$0xff]  }
  0x91   :  { %1310 = vmatprep.subr.bf16.mxu0 %v2757_v12  ;;  %1433 = vmatprep.subr.bf16.mxu1 %v2760_v13  ;;  %v2847_v12 = vld [vmem:[#allocation5 + $0x424] ss:$16 sps:$4 sm:$0xff]   ;;  %v2850_v13 = vld [vmem:[#allocation5 + $0x42c] ss:$16 sps:$4 sm:$0xff]  }
  0x94   :  { %1311 = vmatpush1.bf16.msra.mxu0 %v2755_v14  ;;  %1434 = vmatpush1.bf16.msra.mxu1 %v2758_v15  ;;  %v84_v14 = vld [vmem:[#allocation2 + $0x28] sm:$0xff] }
  0x95   :  { %1312 = vmatprep.subr.bf16.mxu0 %v2763_v16  ;;  %1435 = vmatprep.subr.bf16.mxu1 %v2766_v17  ;;  %v90_v15 = vpack.c.bf16 %v84_v14, %v84_v14  ;;  %v2845_v16 = vld [vmem:[#allocation5 + $0x420] ss:$16 sps:$4 sm:$0xff]   ;;  %v2848_v17 = vld [vmem:[#allocation5 + $0x428] ss:$16 sps:$4 sm:$0xff]  }
  0x98   :  { %1313 = vmatpush1.bf16.msra.mxu0 %v2761_v18  ;;  %1436 = vmatpush1.bf16.msra.mxu1 %v2764_v19  ;;  %v2853_v18 = vld [vmem:[#allocation5 + $0x444] ss:$16 sps:$4 sm:$0xff]   ;;  %v2856_v19 = vld [vmem:[#allocation5 + $0x44c] ss:$16 sps:$4 sm:$0xff]  }
  0x99   :  { %1314 = vmatprep.subr.bf16.mxu0 %v2769_v20  ;;  %1437 = vmatprep.subr.bf16.mxu1 %v2772_v21  ;;  %v2851_v20 = vld [vmem:[#allocation5 + $0x440] ss:$16 sps:$4 sm:$0xff]   ;;  %v2854_v21 = vld [vmem:[#allocation5 + $0x448] ss:$16 sps:$4 sm:$0xff]  }
  0x9c   :  { %1315 = vmatpush1.bf16.msra.mxu0 %v2767_v22  ;;  %1438 = vmatpush1.bf16.msra.mxu1 %v2770_v23  ;;  %v2859_v22 = vld [vmem:[#allocation5 + $0x464] ss:$16 sps:$4 sm:$0xff]   ;;  %v2862_v23 = vld [vmem:[#allocation5 + $0x46c] ss:$16 sps:$4 sm:$0xff]  }
  0x9d   :  { %1316 = vmatprep.subr.bf16.mxu0 %v2775_v24  ;;  %1439 = vmatprep.subr.bf16.mxu1 %v2778_v25  ;;  %v2857_v24 = vld [vmem:[#allocation5 + $0x460] ss:$16 sps:$4 sm:$0xff]   ;;  %v2860_v25 = vld [vmem:[#allocation5 + $0x468] ss:$16 sps:$4 sm:$0xff]  }
  0xa0   :  { %1317 = vmatpush1.bf16.msra.mxu0 %v2773_v26  ;;  %1440 = vmatpush1.bf16.msra.mxu1 %v2776_v27  ;;  %v2865_v26 = vld [vmem:[#allocation5 + $0x484] ss:$16 sps:$4 sm:$0xff]   ;;  %v2868_v27 = vld [vmem:[#allocation5 + $0x48c] ss:$16 sps:$4 sm:$0xff]  }
  0xa1   :  { %1318 = vmatprep.subr.bf16.mxu0 %v2781_v28  ;;  %1441 = vmatprep.subr.bf16.mxu1 %v2784_v29  ;;  %v2863_v28 = vld [vmem:[#allocation5 + $0x480] ss:$16 sps:$4 sm:$0xff]   ;;  %v2866_v29 = vld [vmem:[#allocation5 + $0x488] ss:$16 sps:$4 sm:$0xff]  }
  0xa4   :  { %1319 = vmatpush1.bf16.msra.mxu0 %v2779_v31  ;;  %1442 = vmatpush1.bf16.msra.mxu1 %v2782_v33  ;;  %v2874_v31 = vld [vmem:[#allocation5 + $0x4ac] ss:$16 sps:$4 sm:$0xff]   ;;  %v2872_v33 = vld [vmem:[#allocation5 + $0x4a8] ss:$16 sps:$4 sm:$0xff]  }
  0xa5   :  { %1320 = vmatprep.subr.bf16.mxu0 %v2787_v34  ;;  %1443 = vmatprep.subr.bf16.mxu1 %v2790_v35  ;;  %v2877_v34 = vld [vmem:[#allocation5 + $0x4c4] ss:$16 sps:$4 sm:$0xff]   ;;  %v2880_v35 = vld [vmem:[#allocation5 + $0x4cc] ss:$16 sps:$4 sm:$0xff]  }
  0xa8   :  { %1321 = vmatpush1.bf16.msra.mxu0 %v2785_v36  ;;  %1444 = vmatpush1.bf16.msra.mxu1 %v2788_v37  ;;  %v2875_v36 = vld [vmem:[#allocation5 + $0x4c0] ss:$16 sps:$4 sm:$0xff]   ;;  %v2878_v37 = vld [vmem:[#allocation5 + $0x4c8] ss:$16 sps:$4 sm:$0xff]  }
  0xa9   :  { %1322 = vmatprep.subr.bf16.mxu0 %v2793_v38  ;;  %1445 = vmatprep.subr.bf16.mxu1 %v2796_v39  ;;  %v2883_v38 = vld [vmem:[#allocation5 + $0x4e4] ss:$16 sps:$4 sm:$0xff]   ;;  %v2886_v39 = vld [vmem:[#allocation5 + $0x4ec] ss:$16 sps:$4 sm:$0xff]  }
  0xac   :  { %1323 = vmatpush1.bf16.msra.mxu0 %v2791_v40  ;;  %1446 = vmatpush1.bf16.msra.mxu1 %v2794_v41  ;;  %v2881_v40 = vld [vmem:[#allocation5 + $0x4e0] ss:$16 sps:$4 sm:$0xff]   ;;  %v2884_v41 = vld [vmem:[#allocation5 + $0x4e8] ss:$16 sps:$4 sm:$0xff]  }
  0xad   :  { %1324 = vmatprep.subr.bf16.mxu0 %v2799_v42  ;;  %1447 = vmatprep.subr.bf16.mxu1 %v2802_v43  ;;  %v2889_v42 = vld [vmem:[#allocation5 + $0x504] ss:$16 sps:$4 sm:$0xff]   ;;  %v2892_v43 = vld [vmem:[#allocation5 + $0x50c] ss:$16 sps:$4 sm:$0xff]  }
  0xb0   :  { %1325 = vmatpush1.bf16.msra.mxu0 %v2797_v44  ;;  %1448 = vmatpush1.bf16.msra.mxu1 %v2800_v45  ;;  %v2887_v44 = vld [vmem:[#allocation5 + $0x500] ss:$16 sps:$4 sm:$0xff]   ;;  %v2890_v45 = vld [vmem:[#allocation5 + $0x508] ss:$16 sps:$4 sm:$0xff]  }
  0xb1   :  { %1326 = vmatprep.subr.bf16.mxu0 %v2805_v46  ;;  %1449 = vmatprep.subr.bf16.mxu1 %v2808_v47  ;;  %v2895_v46 = vld [vmem:[#allocation5 + $0x524] ss:$16 sps:$4 sm:$0xff]   ;;  %v2898_v47 = vld [vmem:[#allocation5 + $0x52c] ss:$16 sps:$4 sm:$0xff]  }
  0xb4   :  { %1327 = vmatpush1.bf16.msra.mxu0 %v2803_v48  ;;  %1450 = vmatpush1.bf16.msra.mxu1 %v2806_v49  ;;  %v2893_v48 = vld [vmem:[#allocation5 + $0x520] ss:$16 sps:$4 sm:$0xff]   ;;  %v2896_v49 = vld [vmem:[#allocation5 + $0x528] ss:$16 sps:$4 sm:$0xff]  }
  0xb5   :  { %1328 = vmatprep.subr.bf16.mxu0 %v2811_v50  ;;  %1451 = vmatprep.subr.bf16.mxu1 %v2814_v51  ;;  %v2901_v50 = vld [vmem:[#allocation5 + $0x544] ss:$16 sps:$4 sm:$0xff]   ;;  %v2904_v51 = vld [vmem:[#allocation5 + $0x54c] ss:$16 sps:$4 sm:$0xff]  }
  0xb8   :  { %1329 = vmatpush1.bf16.msra.mxu0 %v2809_v52  ;;  %1452 = vmatpush1.bf16.msra.mxu1 %v2812_v53  ;;  %v2899_v52 = vld [vmem:[#allocation5 + $0x540] ss:$16 sps:$4 sm:$0xff]   ;;  %v2902_v53 = vld [vmem:[#allocation5 + $0x548] ss:$16 sps:$4 sm:$0xff]  }
  0xb9   :  { %1330 = vmatprep.subr.bf16.mxu0 %v2817_v54  ;;  %1453 = vmatprep.subr.bf16.mxu1 %v2820_v55  ;;  %v2907_v54 = vld [vmem:[#allocation5 + $0x564] ss:$16 sps:$4 sm:$0xff]   ;;  %v2910_v55 = vld [vmem:[#allocation5 + $0x56c] ss:$16 sps:$4 sm:$0xff]  }
  0xbc   :  { %1331 = vmatpush1.bf16.msra.mxu0 %v2815_v56  ;;  %1454 = vmatpush1.bf16.msra.mxu1 %v2818_v57  ;;  %v2905_v56 = vld [vmem:[#allocation5 + $0x560] ss:$16 sps:$4 sm:$0xff]   ;;  %v2908_v57 = vld [vmem:[#allocation5 + $0x568] ss:$16 sps:$4 sm:$0xff]  }
  0xbd   :  { %1332 = vmatprep.subr.bf16.mxu0 %v2823_v58  ;;  %1455 = vmatprep.subr.bf16.mxu1 %v2826_v59  ;;  %v2913_v58 = vld [vmem:[#allocation5 + $0x584] ss:$16 sps:$4 sm:$0xff]   ;;  %v2916_v59 = vld [vmem:[#allocation5 + $0x58c] ss:$16 sps:$4 sm:$0xff]  }
  0xc0   :  { %1333 = vmatpush1.bf16.msra.mxu0 %v2821_v60  ;;  %1456 = vmatpush1.bf16.msra.mxu1 %v2824_v61  ;;  %v2911_v60 = vld [vmem:[#allocation5 + $0x580] ss:$16 sps:$4 sm:$0xff]   ;;  %v2914_v61 = vld [vmem:[#allocation5 + $0x588] ss:$16 sps:$4 sm:$0xff]  }
  0xc1   :  { %1334 = vmatprep.subr.bf16.mxu0 %v2829_v62  ;;  %1457 = vmatprep.subr.bf16.mxu1 %v2832_v63  ;;  %v2919_v62 = vld [vmem:[#allocation5 + $0x5a4] ss:$16 sps:$4 sm:$0xff]   ;;  %v2922_v63 = vld [vmem:[#allocation5 + $0x5ac] ss:$16 sps:$4 sm:$0xff]  }
  0xc4   :  { %1335 = vmatpush1.bf16.msra.mxu0 %v2827_v0  ;;  %1458 = vmatpush1.bf16.msra.mxu1 %v2830_v1  ;;  %v2917_v0 = vld [vmem:[#allocation5 + $0x5a0] ss:$16 sps:$4 sm:$0xff]   ;;  %v2920_v1 = vld [vmem:[#allocation5 + $0x5a8] ss:$16 sps:$4 sm:$0xff]  }
  0xc5   :  { %1336 = vmatprep.subr.bf16.mxu0 %v2835_v2  ;;  %1459 = vmatprep.subr.bf16.mxu1 %v2838_v3  ;;  %v2925_v2 = vld [vmem:[#allocation5 + $0x5c4] ss:$16 sps:$4 sm:$0xff]   ;;  %v2928_v3 = vld [vmem:[#allocation5 + $0x5cc] ss:$16 sps:$4 sm:$0xff]  }
  0xc8   :  { %1337 = vmatpush1.bf16.msra.mxu0 %v2833_v4  ;;  %1460 = vmatpush1.bf16.msra.mxu1 %v2836_v5  ;;  %v2923_v4 = vld [vmem:[#allocation5 + $0x5c0] ss:$16 sps:$4 sm:$0xff]   ;;  %v2926_v5 = vld [vmem:[#allocation5 + $0x5c8] ss:$16 sps:$4 sm:$0xff]  }
  0xc9   :  { %1347 = vmatprep.subr.bf16.mxu0 %v2841_v6  ;;  %1470 = vmatprep.subr.bf16.mxu1 %v2844_v8  ;;  %v2931_v6 = vld [vmem:[#allocation5 + $0x5e4] ss:$16 sps:$4 sm:$0xff]   ;;  %v2929_v8 = vld [vmem:[#allocation5 + $0x5e0] ss:$16 sps:$4 sm:$0xff]  }
  0xcb   :  { %1339 = vmatmul.mubr.bf16.vlgmr.msra.gmra.mrb[0].mxu0 %v87_v10  ;;  %1462 = vmatmul.mubr.bf16.vlgmr.msra.gmra.mrb[0].mxu1 %v87_v10  ;;  %v83_v10 = vld [vmem:[#allocation2 + $0x20] sm:$0xff] }
  0xcc   :  { %1348 = vmatpush1.bf16.msra.mxu0 %v2839_v9  ;;  %1471 = vmatpush1.bf16.msra.mxu1 %v2842_v11  ;;  %v2932_v9 = vld [vmem:[#allocation5 + $0x5e8] ss:$16 sps:$4 sm:$0xff]   ;;  %v2937_v11 = vld [vmem:[#allocation8 + $0x4] ss:$16 sps:$4 sm:$0xff]   ;;  %v89_v14 = vpack.c.bf16 %v83_v10, %v83_v10 }
  0xcd   :  { %1349 = vmatprep.subr.bf16.mxu0 %v2847_v12  ;;  %1472 = vmatprep.subr.bf16.mxu1 %v2850_v13  ;;  %v2940_v12 = vld [vmem:[#allocation8 + $0xc] ss:$16 sps:$4 sm:$0xff]   ;;  %v2935_v13 = vld [vmem:[#allocation8] ss:$16 sps:$4 sm:$0xff]   ;;  %v3027_v10 = vld [vmem:[#allocation8 + $0x1e4] ss:$16 sps:$4 sm:$0xff]  }
  0xce   :  { %1379 = vmatprep.mubr.bf16.mxu0 %v90_v15  ;;  %1502 = vmatprep.mubr.bf16.mxu1 %v90_v15  ;;  %v2938_v15 = vld [vmem:[#allocation8 + $0x8] ss:$16 sps:$4 sm:$0xff]  }
  0xd0   :  { %1350 = vmatpush1.bf16.msra.mxu0 %v2845_v16  ;;  %1473 = vmatpush1.bf16.msra.mxu1 %v2848_v17  ;;  %v1516_v16 = vld [vmem:[#allocation7 + $0x8] sm:$0xff] }
  0xd1   :  { %1351 = vmatprep.subr.bf16.mxu0 %v2853_v18  ;;  %1474 = vmatprep.subr.bf16.mxu1 %v2856_v19  ;;  %v2943_v17 = vld [vmem:[#allocation8 + $0x24] ss:$16 sps:$4 sm:$0xff]   ;;  %v2946_v18 = vld [vmem:[#allocation8 + $0x2c] ss:$16 sps:$4 sm:$0xff]   ;;  %v1519_v19 = vpack.c.bf16 %v1516_v16, %v1516_v16 }
  0xd2   :  { %v3036_v16 = vld [vmem:[#allocation8 + $0x20c] ss:$16 sps:$4 sm:$0xff]  }
  0xd4   :  { %1352 = vmatpush1.bf16.msra.mxu0 %v2851_v20  ;;  %1475 = vmatpush1.bf16.msra.mxu1 %v2854_v21  ;;  %v2941_v20 = vld [vmem:[#allocation8 + $0x20] ss:$16 sps:$4 sm:$0xff]   ;;  %v2944_v21 = vld [vmem:[#allocation8 + $0x28] ss:$16 sps:$4 sm:$0xff]  }
  0xd5   :  { %1353 = vmatprep.subr.bf16.mxu0 %v2859_v22  ;;  %1476 = vmatprep.subr.bf16.mxu1 %v2862_v23  ;;  %v2949_v22 = vld [vmem:[#allocation8 + $0x44] ss:$16 sps:$4 sm:$0xff]   ;;  %v2952_v23 = vld [vmem:[#allocation8 + $0x4c] ss:$16 sps:$4 sm:$0xff]  }
  0xd8   :  { %1354 = vmatpush1.bf16.msra.mxu0 %v2857_v24  ;;  %1477 = vmatpush1.bf16.msra.mxu1 %v2860_v25  ;;  %v2947_v24 = vld [vmem:[#allocation8 + $0x40] ss:$16 sps:$4 sm:$0xff]   ;;  %v2950_v25 = vld [vmem:[#allocation8 + $0x48] ss:$16 sps:$4 sm:$0xff]  }
  0xd9   :  { %1355 = vmatprep.subr.bf16.mxu0 %v2865_v26  ;;  %1478 = vmatprep.subr.bf16.mxu1 %v2868_v27  ;;  %v2955_v26 = vld [vmem:[#allocation8 + $0x64] ss:$16 sps:$4 sm:$0xff]   ;;  %v2958_v27 = vld [vmem:[#allocation8 + $0x6c] ss:$16 sps:$4 sm:$0xff]  }
  0xdc   :  { %1356 = vmatpush1.bf16.msra.mxu0 %v2863_v28  ;;  %1479 = vmatpush1.bf16.msra.mxu1 %v2866_v29  ;;  %v2953_v28 = vld [vmem:[#allocation8 + $0x60] ss:$16 sps:$4 sm:$0xff]   ;;  %v2956_v29 = vld [vmem:[#allocation8 + $0x68] ss:$16 sps:$4 sm:$0xff]  }
  0xdd   :  { %1357 = vmatprep.subr.bf16.mxu0 %v2871_v30  ;;  %1480 = vmatprep.subr.bf16.mxu1 %v2874_v31  ;;  %v2961_v30 = vld [vmem:[#allocation8 + $0x84] ss:$16 sps:$4 sm:$0xff]   ;;  %v2964_v31 = vld [vmem:[#allocation8 + $0x8c] ss:$16 sps:$4 sm:$0xff]  }
  0xe0   :  { %1358 = vmatpush1.bf16.msra.mxu0 %v2869_v32  ;;  %1481 = vmatpush1.bf16.msra.mxu1 %v2872_v33  ;;  %v2959_v32 = vld [vmem:[#allocation8 + $0x80] ss:$16 sps:$4 sm:$0xff]   ;;  %v2962_v33 = vld [vmem:[#allocation8 + $0x88] ss:$16 sps:$4 sm:$0xff]  }
  0xe1   :  { %1359 = vmatprep.subr.bf16.mxu0 %v2877_v34  ;;  %1482 = vmatprep.subr.bf16.mxu1 %v2880_v35  ;;  %v2967_v34 = vld [vmem:[#allocation8 + $0xa4] ss:$16 sps:$4 sm:$0xff]   ;;  %v2970_v35 = vld [vmem:[#allocation8 + $0xac] ss:$16 sps:$4 sm:$0xff]  }
  0xe4   :  { %1360 = vmatpush1.bf16.msra.mxu0 %v2875_v36  ;;  %1483 = vmatpush1.bf16.msra.mxu1 %v2878_v37  ;;  %v2965_v36 = vld [vmem:[#allocation8 + $0xa0] ss:$16 sps:$4 sm:$0xff]   ;;  %v2968_v37 = vld [vmem:[#allocation8 + $0xa8] ss:$16 sps:$4 sm:$0xff]  }
  0xe5   :  { %1361 = vmatprep.subr.bf16.mxu0 %v2883_v38  ;;  %1484 = vmatprep.subr.bf16.mxu1 %v2886_v39  ;;  %v2973_v38 = vld [vmem:[#allocation8 + $0xc4] ss:$16 sps:$4 sm:$0xff]   ;;  %v2976_v39 = vld [vmem:[#allocation8 + $0xcc] ss:$16 sps:$4 sm:$0xff]  }
  0xe8   :  { %1362 = vmatpush1.bf16.msra.mxu0 %v2881_v40  ;;  %1485 = vmatpush1.bf16.msra.mxu1 %v2884_v41  ;;  %v2971_v40 = vld [vmem:[#allocation8 + $0xc0] ss:$16 sps:$4 sm:$0xff]   ;;  %v2974_v41 = vld [vmem:[#allocation8 + $0xc8] ss:$16 sps:$4 sm:$0xff]  }
  0xe9   :  { %1363 = vmatprep.subr.bf16.mxu0 %v2889_v42  ;;  %1486 = vmatprep.subr.bf16.mxu1 %v2892_v43  ;;  %v2979_v42 = vld [vmem:[#allocation8 + $0xe4] ss:$16 sps:$4 sm:$0xff]   ;;  %v2982_v43 = vld [vmem:[#allocation8 + $0xec] ss:$16 sps:$4 sm:$0xff]  }
  0xec   :  { %1364 = vmatpush1.bf16.msra.mxu0 %v2887_v44  ;;  %1487 = vmatpush1.bf16.msra.mxu1 %v2890_v45  ;;  %v2977_v44 = vld [vmem:[#allocation8 + $0xe0] ss:$16 sps:$4 sm:$0xff]   ;;  %v2980_v45 = vld [vmem:[#allocation8 + $0xe8] ss:$16 sps:$4 sm:$0xff]  }
  0xed   :  { %1365 = vmatprep.subr.bf16.mxu0 %v2895_v46  ;;  %1488 = vmatprep.subr.bf16.mxu1 %v2898_v47  ;;  %v2985_v46 = vld [vmem:[#allocation8 + $0x104] ss:$16 sps:$4 sm:$0xff]   ;;  %v2988_v47 = vld [vmem:[#allocation8 + $0x10c] ss:$16 sps:$4 sm:$0xff]  }
  0xf0   :  { %1366 = vmatpush1.bf16.msra.mxu0 %v2893_v48  ;;  %1489 = vmatpush1.bf16.msra.mxu1 %v2896_v49  ;;  %v2983_v48 = vld [vmem:[#allocation8 + $0x100] ss:$16 sps:$4 sm:$0xff]   ;;  %v2986_v49 = vld [vmem:[#allocation8 + $0x108] ss:$16 sps:$4 sm:$0xff]  }
  0xf1   :  { %1367 = vmatprep.subr.bf16.mxu0 %v2901_v50  ;;  %1490 = vmatprep.subr.bf16.mxu1 %v2904_v51  ;;  %v2991_v50 = vld [vmem:[#allocation8 + $0x124] ss:$16 sps:$4 sm:$0xff]   ;;  %v2994_v51 = vld [vmem:[#allocation8 + $0x12c] ss:$16 sps:$4 sm:$0xff]  }
  0xf4   :  { %1368 = vmatpush1.bf16.msra.mxu0 %v2899_v52  ;;  %1491 = vmatpush1.bf16.msra.mxu1 %v2902_v53  ;;  %v2989_v52 = vld [vmem:[#allocation8 + $0x120] ss:$16 sps:$4 sm:$0xff]   ;;  %v2992_v53 = vld [vmem:[#allocation8 + $0x128] ss:$16 sps:$4 sm:$0xff]  }
  0xf5   :  { %1369 = vmatprep.subr.bf16.mxu0 %v2907_v54  ;;  %1492 = vmatprep.subr.bf16.mxu1 %v2910_v55  ;;  %v2997_v54 = vld [vmem:[#allocation8 + $0x144] ss:$16 sps:$4 sm:$0xff]   ;;  %v3000_v55 = vld [vmem:[#allocation8 + $0x14c] ss:$16 sps:$4 sm:$0xff]  }
  0xf8   :  { %1370 = vmatpush1.bf16.msra.mxu0 %v2905_v56  ;;  %1493 = vmatpush1.bf16.msra.mxu1 %v2908_v57  ;;  %v2995_v56 = vld [vmem:[#allocation8 + $0x140] ss:$16 sps:$4 sm:$0xff]   ;;  %v2998_v57 = vld [vmem:[#allocation8 + $0x148] ss:$16 sps:$4 sm:$0xff]  }
  0xf9   :  { %1371 = vmatprep.subr.bf16.mxu0 %v2913_v58  ;;  %1494 = vmatprep.subr.bf16.mxu1 %v2916_v59  ;;  %v3003_v58 = vld [vmem:[#allocation8 + $0x164] ss:$16 sps:$4 sm:$0xff]   ;;  %v3006_v59 = vld [vmem:[#allocation8 + $0x16c] ss:$16 sps:$4 sm:$0xff]  }
  0xfc   :  { %1372 = vmatpush1.bf16.msra.mxu0 %v2911_v60  ;;  %1495 = vmatpush1.bf16.msra.mxu1 %v2914_v61  ;;  %v3001_v60 = vld [vmem:[#allocation8 + $0x160] ss:$16 sps:$4 sm:$0xff]   ;;  %v3004_v61 = vld [vmem:[#allocation8 + $0x168] ss:$16 sps:$4 sm:$0xff]  }
  0xfd   :  { %1373 = vmatprep.subr.bf16.mxu0 %v2919_v62  ;;  %1496 = vmatprep.subr.bf16.mxu1 %v2922_v63  ;;  %v3009_v62 = vld [vmem:[#allocation8 + $0x184] ss:$16 sps:$4 sm:$0xff]   ;;  %v3012_v63 = vld [vmem:[#allocation8 + $0x18c] ss:$16 sps:$4 sm:$0xff]  }
 0x100   :  { %1374 = vmatpush1.bf16.msra.mxu0 %v2917_v0  ;;  %1497 = vmatpush1.bf16.msra.mxu1 %v2920_v1  ;;  %v3007_v0 = vld [vmem:[#allocation8 + $0x180] ss:$16 sps:$4 sm:$0xff]   ;;  %v3010_v1 = vld [vmem:[#allocation8 + $0x188] ss:$16 sps:$4 sm:$0xff]  }
 0x101   :  { %1375 = vmatprep.subr.bf16.mxu0 %v2925_v2  ;;  %1498 = vmatprep.subr.bf16.mxu1 %v2928_v3  ;;  %v3015_v2 = vld [vmem:[#allocation8 + $0x1a4] ss:$16 sps:$4 sm:$0xff]   ;;  %v3018_v3 = vld [vmem:[#allocation8 + $0x1ac] ss:$16 sps:$4 sm:$0xff]  }
 0x104   :  { %1376 = vmatpush1.bf16.msra.mxu0 %v2923_v4  ;;  %1499 = vmatpush1.bf16.msra.mxu1 %v2926_v5  ;;  %v3013_v4 = vld [vmem:[#allocation8 + $0x1a0] ss:$16 sps:$4 sm:$0xff]   ;;  %v3016_v5 = vld [vmem:[#allocation8 + $0x1a8] ss:$16 sps:$4 sm:$0xff]  }
 0x105   :  { %1377 = vmatprep.subr.bf16.mxu0 %v2931_v6  ;;  %1500 = vmatprep.subr.bf16.mxu1 %v2934_v7  ;;  %v3021_v6 = vld [vmem:[#allocation8 + $0x1c4] ss:$16 sps:$4 sm:$0xff]   ;;  %v3024_v7 = vld [vmem:[#allocation8 + $0x1cc] ss:$16 sps:$4 sm:$0xff]  }
 0x108   :  { %1378 = vmatpush1.bf16.msra.mxu0 %v2929_v8  ;;  %1501 = vmatpush1.bf16.msra.mxu1 %v2932_v9  ;;  %v3019_v8 = vld [vmem:[#allocation8 + $0x1c0] ss:$16 sps:$4 sm:$0xff]   ;;  %v3022_v9 = vld [vmem:[#allocation8 + $0x1c8] ss:$16 sps:$4 sm:$0xff]  }
 0x109   :  { %2119 = vmatprep.subr.bf16.mxu0 %v2937_v11  ;;  %2201 = vmatprep.subr.bf16.mxu1 %v2940_v12  ;;  %v3030_v11 = vld [vmem:[#allocation8 + $0x1ec] ss:$16 sps:$4 sm:$0xff]   ;;  %v3025_v12 = vld [vmem:[#allocation8 + $0x1e0] ss:$16 sps:$4 sm:$0xff]  }
 0x10b   :  { %1380 = vmatmul.mubr.bf16.vlgmr.msra.gmra.mrb[0].mxu0 %v89_v14  ;;  %1503 = vmatmul.mubr.bf16.vlgmr.msra.gmra.mrb[0].mxu1 %v89_v14  ;;  %v1515_v14 = vld [vmem:[#allocation7] sm:$0xff] }
 0x10c   :  { %2120 = vmatpush1.bf16.msra.mxu0 %v2935_v13  ;;  %2202 = vmatpush1.bf16.msra.mxu1 %v2938_v15  ;;  %v3028_v13 = vld [vmem:[#allocation8 + $0x1e8] ss:$16 sps:$4 sm:$0xff]   ;;  %v3033_v15 = vld [vmem:[#allocation8 + $0x204] ss:$16 sps:$4 sm:$0xff]  }
 0x10d   :  { %2121 = vmatprep.subr.bf16.mxu0 %v2943_v17  ;;  %2203 = vmatprep.subr.bf16.mxu1 %v2946_v18  ;;  %v1518_v17 = vpack.c.bf16 %v1515_v14, %v1515_v14  ;;  %v3031_v18 = vld [vmem:[#allocation8 + $0x200] ss:$16 sps:$4 sm:$0xff]  }
 0x10e   :  { %2151 = vmatprep.mubr.bf16.mxu0 %v1519_v19  ;;  %2233 = vmatprep.mubr.bf16.mxu1 %v1519_v19  ;;  %v3034_v19 = vld [vmem:[#allocation8 + $0x208] ss:$16 sps:$4 sm:$0xff]  }
 0x110   :  { %2122 = vmatpush1.bf16.msra.mxu0 %v2941_v20  ;;  %2204 = vmatpush1.bf16.msra.mxu1 %v2944_v21  ;;  %v3039_v20 = vld [vmem:[#allocation8 + $0x224] ss:$16 sps:$4 sm:$0xff]   ;;  %v3042_v21 = vld [vmem:[#allocation8 + $0x22c] ss:$16 sps:$4 sm:$0xff]  }
 0x111   :  { %2123 = vmatprep.subr.bf16.mxu0 %v2949_v22  ;;  %2205 = vmatprep.subr.bf16.mxu1 %v2952_v23  ;;  %v3037_v22 = vld [vmem:[#allocation8 + $0x220] ss:$16 sps:$4 sm:$0xff]   ;;  %v3040_v23 = vld [vmem:[#allocation8 + $0x228] ss:$16 sps:$4 sm:$0xff]  }
 0x114   :  { %2124 = vmatpush1.bf16.msra.mxu0 %v2947_v24  ;;  %2206 = vmatpush1.bf16.msra.mxu1 %v2950_v25  ;;  %v3045_v24 = vld [vmem:[#allocation8 + $0x244] ss:$16 sps:$4 sm:$0xff]   ;;  %v3048_v25 = vld [vmem:[#allocation8 + $0x24c] ss:$16 sps:$4 sm:$0xff]  }
 0x115   :  { %2125 = vmatprep.subr.bf16.mxu0 %v2955_v26  ;;  %2207 = vmatprep.subr.bf16.mxu1 %v2958_v27  ;;  %v3227_v26 = vmov 0   ;;  %v3043_v27 = vld [vmem:[#allocation8 + $0x240] ss:$16 sps:$4 sm:$0xff]  }
 0x118   :  { %2126 = vmatpush1.bf16.msra.mxu0 %v2953_v28  ;;  %2208 = vmatpush1.bf16.msra.mxu1 %v2956_v29  ;;  %v3046_v28 = vld [vmem:[#allocation8 + $0x248] ss:$16 sps:$4 sm:$0xff]   ;;  %v3051_v29 = vld [vmem:[#allocation8 + $0x264] ss:$16 sps:$4 sm:$0xff]  }
 0x119   :  { %2127 = vmatprep.subr.bf16.mxu0 %v2961_v30  ;;  %2209 = vmatprep.subr.bf16.mxu1 %v2964_v31  ;;  %v3054_v30 = vld [vmem:[#allocation8 + $0x26c] ss:$16 sps:$4 sm:$0xff]   ;;  %v3049_v31 = vld [vmem:[#allocation8 + $0x260] ss:$16 sps:$4 sm:$0xff]  }
 0x11c   :  { %2128 = vmatpush1.bf16.msra.mxu0 %v2959_v32  ;;  %2210 = vmatpush1.bf16.msra.mxu1 %v2962_v33  ;;  %v3052_v32 = vld [vmem:[#allocation8 + $0x268] ss:$16 sps:$4 sm:$0xff]   ;;  %v3057_v33 = vld [vmem:[#allocation8 + $0x284] ss:$16 sps:$4 sm:$0xff]  }
 0x11d   :  { %2129 = vmatprep.subr.bf16.mxu0 %v2967_v34  ;;  %2211 = vmatprep.subr.bf16.mxu1 %v2970_v35  ;;  %v3060_v34 = vld [vmem:[#allocation8 + $0x28c] ss:$16 sps:$4 sm:$0xff]   ;;  %v3055_v35 = vld [vmem:[#allocation8 + $0x280] ss:$16 sps:$4 sm:$0xff]  }
 0x120   :  { %2130 = vmatpush1.bf16.msra.mxu0 %v2965_v36  ;;  %2212 = vmatpush1.bf16.msra.mxu1 %v2968_v37  ;;  %v3058_v36 = vld [vmem:[#allocation8 + $0x288] ss:$16 sps:$4 sm:$0xff]   ;;  %v3063_v37 = vld [vmem:[#allocation8 + $0x2a4] ss:$16 sps:$4 sm:$0xff]  }
 0x121   :  { %2131 = vmatprep.subr.bf16.mxu0 %v2973_v38  ;;  %2213 = vmatprep.subr.bf16.mxu1 %v2976_v39  ;;  %v3066_v38 = vld [vmem:[#allocation8 + $0x2ac] ss:$16 sps:$4 sm:$0xff]   ;;  %v3061_v39 = vld [vmem:[#allocation8 + $0x2a0] ss:$16 sps:$4 sm:$0xff]  }
 0x124   :  { %2132 = vmatpush1.bf16.msra.mxu0 %v2971_v40  ;;  %2214 = vmatpush1.bf16.msra.mxu1 %v2974_v41  ;;  %v3064_v40 = vld [vmem:[#allocation8 + $0x2a8] ss:$16 sps:$4 sm:$0xff]   ;;  %v3069_v41 = vld [vmem:[#allocation8 + $0x2c4] ss:$16 sps:$4 sm:$0xff]  }
 0x125   :  { %2133 = vmatprep.subr.bf16.mxu0 %v2979_v42  ;;  %2215 = vmatprep.subr.bf16.mxu1 %v2982_v43  ;;  %v3072_v42 = vld [vmem:[#allocation8 + $0x2cc] ss:$16 sps:$4 sm:$0xff]   ;;  %v3067_v43 = vld [vmem:[#allocation8 + $0x2c0] ss:$16 sps:$4 sm:$0xff]  }
 0x128   :  { %2134 = vmatpush1.bf16.msra.mxu0 %v2977_v44  ;;  %2216 = vmatpush1.bf16.msra.mxu1 %v2980_v45  ;;  %v3070_v44 = vld [vmem:[#allocation8 + $0x2c8] ss:$16 sps:$4 sm:$0xff]   ;;  %v3075_v45 = vld [vmem:[#allocation8 + $0x2e4] ss:$16 sps:$4 sm:$0xff]  }
 0x129   :  { %2135 = vmatprep.subr.bf16.mxu0 %v2985_v46  ;;  %2217 = vmatprep.subr.bf16.mxu1 %v2988_v47  ;;  %v3078_v46 = vld [vmem:[#allocation8 + $0x2ec] ss:$16 sps:$4 sm:$0xff]   ;;  %v3073_v47 = vld [vmem:[#allocation8 + $0x2e0] ss:$16 sps:$4 sm:$0xff]  }
 0x12c   :  { %2136 = vmatpush1.bf16.msra.mxu0 %v2983_v48  ;;  %2218 = vmatpush1.bf16.msra.mxu1 %v2986_v49  ;;  %v3076_v48 = vld [vmem:[#allocation8 + $0x2e8] ss:$16 sps:$4 sm:$0xff]  }
 0x12d   :  { %2137 = vmatprep.subr.bf16.mxu0 %v2991_v50  ;;  %2219 = vmatprep.subr.bf16.mxu1 %v2994_v51  ;;  %v1517_v49 = vld [vmem:[#allocation7 + $0x10] sm:$0xff]  ;;  %v285_v51 = vlaneseq }
 0x12e   :  { %v1520_v50 = vpack.c.bf16 %v1517_v49, %v1517_v49 }
 0x130   :  { %2138 = vmatpush1.bf16.msra.mxu0 %v2989_v52  ;;  %2220 = vmatpush1.bf16.msra.mxu1 %v2992_v53  ;;  %v286_v52 = vshrl.u32 %v285_v51, 7 }
 0x131   :  { %2139 = vmatprep.subr.bf16.mxu0 %v2997_v54  ;;  %2221 = vmatprep.subr.bf16.mxu1 %v3000_v55  ;;  %v283_v55 = vld [vmem:[%s3356_s2] sm:$0xf]  ;;  %s3167_s2 = scalar_lea.vmem %s2294_s25, 512 }
 0x132   :  { %v287_v53 = vsub.s32 0, %v286_v52  ;;  %v295_v54 = vsub.s32 2, %v286_v52  ;;  %p3168_p4 = scmp.ne.s32.totalorder %s2294_s25, %s3167_s2  ;;  %p3173_p6 = scmp.lt.s32.totalorder %s3167_s2, %s3167_s2 }
 0x134   :  { %2140 = vmatpush1.bf16.msra.mxu0 %v2995_v56  ;;  %2222 = vmatpush1.bf16.msra.mxu1 %v2998_v57  ;;  %v291_v56 = vsub.s32 1, %v286_v52  ;;  %v299_v57 = vsub.s32 3, %v286_v52  ;;  %p3174_p7 = por %p3173_p6, %p3172_p5 }
 0x135   :  { %2141 = vmatprep.subr.bf16.mxu0 %v3003_v58  ;;  %2223 = vmatprep.subr.bf16.mxu1 %v3006_v59  ;;  %v288_v58 = vrot.slane %v283_v55, %v287_v53  ;;  %v296_v59 = vrot.slane %v283_v55, %v295_v54 }
 0x136   :  { %p3175_p8 = pnand %p3174_p7, %p3168_p4 }
 0x138   :  { %2142 = vmatpush1.bf16.msra.mxu0 %v3001_v60  ;;  %2224 = vmatpush1.bf16.msra.mxu1 %v3004_v61  ;;  %v292_v60 = vrot.slane %v283_v55, %v291_v56  ;;  %v300_v61 = vrot.slane %v283_v55, %v299_v57 }
 0x139   :  { %2143 = vmatprep.subr.bf16.mxu0 %v3009_v62  ;;  %2225 = vmatprep.subr.bf16.mxu1 %v3012_v63 }
 0x13c   :  { %2144 = vmatpush1.bf16.msra.mxu0 %v3007_v0  ;;  %2226 = vmatpush1.bf16.msra.mxu1 %v3010_v1 }
 0x13d   :  { %2145 = vmatprep.subr.bf16.mxu0 %v3015_v2  ;;  %2227 = vmatprep.subr.bf16.mxu1 %v3018_v3 }
 0x140   :  { %2146 = vmatpush1.bf16.msra.mxu0 %v3013_v4  ;;  %2228 = vmatpush1.bf16.msra.mxu1 %v3016_v5 }
 0x141   :  { %2147 = vmatprep.subr.bf16.mxu0 %v3021_v6  ;;  %2229 = vmatprep.subr.bf16.mxu1 %v3024_v7 }
 0x144   :  { %2148 = vmatpush1.bf16.msra.mxu0 %v3019_v8  ;;  %2230 = vmatpush1.bf16.msra.mxu1 %v3022_v9 }
 0x145   :  { %2149 = vmatprep.subr.bf16.mxu0 %v3027_v10  ;;  %2231 = vmatprep.subr.bf16.mxu1 %v3030_v11 }
 0x148   :  { %2150 = vmatpush1.bf16.msra.mxu0 %v3025_v12  ;;  %2232 = vmatpush1.bf16.msra.mxu1 %v3028_v13 }
 0x149   :  { %2160 = vmatprep.subr.bf16.mxu0 %v3033_v15  ;;  %2242 = vmatprep.subr.bf16.mxu1 %v3036_v16 }
 0x14b   :  { %2152 = vmatmul.mubr.bf16.vlgmr.msra.gmra.mrb[4].mxu0 %v1518_v17  ;;  %2234 = vmatmul.mubr.bf16.vlgmr.msra.gmra.mrb[4].mxu1 %v1518_v17 }
 0x14c   :  { %2161 = vmatpush1.bf16.msra.mxu0 %v3031_v18  ;;  %2243 = vmatpush1.bf16.msra.mxu1 %v3034_v19 }
 0x14d   :  { %2162 = vmatprep.subr.bf16.mxu0 %v3039_v20  ;;  %2244 = vmatprep.subr.bf16.mxu1 %v3042_v21 }
 0x14e   :  { %2192 = vmatprep.mubr.bf16.mxu0 %v3227_v26  ;;  %2274 = vmatprep.mubr.bf16.mxu1 %v3227_v26 }
 0x150   :  { %2163 = vmatpush1.bf16.msra.mxu0 %v3037_v22  ;;  %2245 = vmatpush1.bf16.msra.mxu1 %v3040_v23 }
 0x151   :  { %2164 = vmatprep.subr.bf16.mxu0 %v3045_v24  ;;  %2246 = vmatprep.subr.bf16.mxu1 %v3048_v25 }
 0x154   :  { %2165 = vmatpush1.bf16.msra.mxu0 %v3043_v27  ;;  %2247 = vmatpush1.bf16.msra.mxu1 %v3046_v28 }
 0x155   :  { %2166 = vmatprep.subr.bf16.mxu0 %v3051_v29  ;;  %2248 = vmatprep.subr.bf16.mxu1 %v3054_v30 }
 0x158   :  { %2167 = vmatpush1.bf16.msra.mxu0 %v3049_v31  ;;  %2249 = vmatpush1.bf16.msra.mxu1 %v3052_v32 }
 0x159   :  { %2168 = vmatprep.subr.bf16.mxu0 %v3057_v33  ;;  %2250 = vmatprep.subr.bf16.mxu1 %v3060_v34 }
 0x15c   :  { %2169 = vmatpush1.bf16.msra.mxu0 %v3055_v35  ;;  %2251 = vmatpush1.bf16.msra.mxu1 %v3058_v36 }
 0x15d   :  { %2170 = vmatprep.subr.bf16.mxu0 %v3063_v37  ;;  %2252 = vmatprep.subr.bf16.mxu1 %v3066_v38 }
 0x160   :  { %2171 = vmatpush1.bf16.msra.mxu0 %v3061_v39  ;;  %2253 = vmatpush1.bf16.msra.mxu1 %v3064_v40 }
 0x161   :  { %2172 = vmatprep.subr.bf16.mxu0 %v3069_v41  ;;  %2254 = vmatprep.subr.bf16.mxu1 %v3072_v42 }
 0x164   :  { %2173 = vmatpush1.bf16.msra.mxu0 %v3067_v43  ;;  %2255 = vmatpush1.bf16.msra.mxu1 %v3070_v44 }
 0x165   :  { %2174 = vmatprep.subr.bf16.mxu0 %v3075_v45  ;;  %2256 = vmatprep.subr.bf16.mxu1 %v3078_v46 }
 0x168   :  { %2175 = vmatpush1.bf16.msra.mxu0 %v3073_v47  ;;  %2257 = vmatpush1.bf16.msra.mxu1 %v3076_v48 }
 0x16b   :  { %2193 = vmatmul.mubr.bf16.vlgmr.msra.gmra.mrb[4].mxu0 %v1520_v50  ;;  %2275 = vmatmul.mubr.bf16.vlgmr.msra.gmra.mrb[4].mxu1 %v1520_v50 }
 0x1de   :  { %v1381_v62 = vpop.f32.mrb[0].mxu0  ;;  %v1504_v63 = vpop.f32.mrb[0].mxu1 }
 0x1df   :  { %v2606_v0 = vadd.f32 %v1381_v62, %v288_v58  ;;  %v2608_v1 = vadd.f32 %v1504_v63, %v296_v59  ;;  %v1383_v2 = vpop.f32.mrb[1].mxu0  ;;  %v1506_v3 = vpop.f32.mrb[1].mxu1 }
 0x1e0   :  { %v2607_v4 = vadd.f32 %v1383_v2, %v292_v60  ;;  %v2609_v5 = vadd.f32 %v1506_v3, %v300_v61  ;;  %v1385_v6 = vpop.f32.mrb[2].mxu0  ;;  %v1508_v7 = vpop.f32.mrb[2].mxu1 }
 0x1e1   :  { %1511 = vst [vmem:[#allocation10] sm:$0xff] %v2606_v0  ;;  %1513 = vst [vmem:[#allocation10 + $0x10] sm:$0xff] %v2608_v1  ;;  %v1386_v8 = vpop.f32.mrb[3].mxu0  ;;  %v1509_v9 = vpop.f32.mrb[3].mxu1 }
 0x1e2   :  { %1512 = vst [vmem:[#allocation10 + $0x8] sm:$0xff] %v2607_v4  ;;  %1514 = vst [vmem:[#allocation10 + $0x18] sm:$0xff] %v2609_v5 }
 0x1e3   :  { %3178 = shalt.err (!%p3175_p8)
}
 0x1e4   :  { %s3179_s29 = scalar_lea.hbm %s3360_s6, 512 }
 0x1e5   :  { %p3180_p9 = scmp.ne.s32.totalorder %s3360_s6, %s3179_s29  ;;  %p3183_p10 = scmp.lt.u32.totalorder %s3179_s29, %s3360_s6 }
 0x1e7   :  { %p3185_p11 = pnand %p3183_p10, %p3180_p9 }
 0x1e9   :  { %3188 = shalt.err (!%p3185_p11)
}
 0x1ea   :  { %2296 = dma.vmem_to_hbm [thread:$0]  %s2294_s25, 512, %s3360_s6, [#allocation4]   ;;  %v1617_v10 = vld [vmem:[%s3359_s5] sm:$0xf] }
 0x1eb   :  { %v1622_v11 = vrot.slane %v1617_v10, %v287_v53  ;;  %v1630_v12 = vrot.slane %v1617_v10, %v295_v54  ;;  %v1626_v13 = vrot.slane %v1617_v10, %v291_v56  ;;  %v1634_v14 = vrot.slane %v1617_v10, %v299_v57  ;;  %s3229_s16 = smov [#allocation11]  }
 0x1ec   :  { %s2303_s17 = sshll.u32 %s3229_s16, 4  ;;  %s2304_s17 = int_to_ptr.vmem [resolvable:$true] %s2303_s17 }
 0x1ed   :  { %s3189_s5 = scalar_lea.vmem %s2304_s17, 512  ;;  %p3194_p13 = scmp.lt.s32.totalorder %s2304_s17, %s2304_s17 }
 0x1ee   :  { %p3190_p12 = scmp.ne.s32.totalorder %s2304_s17, %s3189_s5  ;;  %p3195_p0 = scmp.lt.s32.totalorder %s3189_s5, %s3189_s5 }
 0x1f0   :  { %p3196_p1 = por %p3195_p0, %p3194_p13 }
 0x1f2   :  { %p3197_p2 = pnand %p3196_p1, %p3190_p12 }
 0x23e   :  { %v2194_v15 = vpop.f32.mrb[4].mxu0  ;;  %v2276_v16 = vpop.f32.mrb[4].mxu1 }
 0x23f   :  { %v2610_v17 = vadd.f32 %v2194_v15, %v1622_v11  ;;  %v2612_v18 = vadd.f32 %v2276_v16, %v1630_v12  ;;  %v2196_v19 = vpop.f32.mrb[5].mxu0  ;;  %v2278_v20 = vpop.f32.mrb[5].mxu1 }
 0x240   :  { %v2611_v21 = vadd.f32 %v2196_v19, %v1626_v13  ;;  %v2613_v22 = vadd.f32 %v2278_v20, %v1634_v14  ;;  %v2198_v23 = vpop.f32.mrb[6].mxu0  ;;  %v2280_v24 = vpop.f32.mrb[6].mxu1 }
 0x241   :  { %2283 = vst [vmem:[#allocation11] sm:$0xff] %v2610_v17  ;;  %2285 = vst [vmem:[#allocation11 + $0x10] sm:$0xff] %v2612_v18  ;;  %v2199_v25 = vpop.f32.mrb[7].mxu0  ;;  %v2281_v26 = vpop.f32.mrb[7].mxu1 }
 0x242   :  { %2284 = vst [vmem:[#allocation11 + $0x8] sm:$0xff] %v2611_v21  ;;  %2286 = vst [vmem:[#allocation11 + $0x18] sm:$0xff] %v2613_v22 }
 0x243   :  { %3200 = shalt.err (!%p3197_p2)
}
 0x244   :  { %s3201_s20 = scalar_lea.hbm %s3361_s7, 512 }
 0x245   :  { %p3202_p3 = scmp.ne.s32.totalorder %s3361_s7, %s3201_s20  ;;  %p3205_p4 = scmp.lt.u32.totalorder %s3201_s20, %s3361_s7 }
 0x247   :  { %p3207_p5 = pnand %p3205_p4, %p3202_p3 }
 0x249   :  { %3210 = shalt.err (!%p3207_p5)
}
 0x24a   :  { %2306 = dma.vmem_to_hbm [thread:$0]  %s2304_s17, 512, %s3361_s7, [#allocation12]  }
 0x24b   :  { %3217 = dma.done.wait [#allocation4], 512  }
 0x24c   :  { %3218 = vsyncadd [#allocation4], 4294966784 }
 0x24d   :  { %3219 = dma.done.wait [#allocation12], 512  }
 0x24e   :  { %3220 = vsyncadd [#allocation12], 4294966784 }
 0x24f   :  { %2313 = vsyncpa [#allocation3], 1 }
 0x250   :  { %2314 = vsyncpa [#allocation6], 1 }
 0x251   :  { %2315 = vsyncpa [#allocation9], 1 }
 0x252   :  { %2316 = vsyncpa [#allocation4], 1 }
 0x253   :  { %2317 = vsyncpa [#allocation12], 1 }

</bundles_post_ra>
